<compile_context>
chip_gen: v7x
topology: tpu7x:2x2x1
jax: 0.10.0
libtpu: 0.0.40
codegen_flags: <defaults>
</compile_context>

<pallas_src>
import jax
import jax.numpy as jnp
from jax.experimental import pallas as pl
from jax.experimental.pallas import tpu as pltpu

_LANE = 128
_MAX_TRIAL_BLOCK = 4096


def _round_up(n, m):
    return ((n + m - 1) // m) * m


def _make_mlp_kernel(n_layers, activation, chunk, n_chunks):
    """Fused per-trial MLP kernel, trials on lanes.

    Ref order: x_ref, (w_0, b_0), ..., (w_{L-1}, b_{L-1}), out_ref
      x_ref : (d_in0,   TB)
      w_l   : (d_in_l,  d_out_l, TB)
      b_l   : (d_out_l, TB)
      out   : (d_out_{L-1}, TB)
    The trial (lane) axis of the VMEM tile is processed `chunk` lanes at a time
    so the f32 working set (h, acc, w_i) stays within the 64-vreg file even for
    large DMA tiles.  `activation` is applied after every layer except the last.
    """

    def kernel(*refs):
        x_ref = refs[0]
        o_ref = refs[-1]

        def compute(sl):
            h = x_ref[:, sl].astype(jnp.float32)               # (d_in0, chunk)
            for li in range(n_layers):
                w_ref = refs[1 + 2 * li]                       # (d_in, d_out, TB)
                b_ref = refs[2 + 2 * li]                       # (d_out, TB)
                d_in = w_ref.shape[0]
                acc = b_ref[:, sl].astype(jnp.float32)         # (d_out, chunk) f32 accum
                # Per-trial matvec as per-lane FMAs on the VPU: broadcast input
                # feature row i across the d_out sublanes and accumulate.  d_in is
                # small for this module (<= a few dozen) so a Python unroll is fine.
                # TODO(synk): on v7x (VALU-bound regime) the broadcast could move to
                # the vld slot via a stride-0 sublane-broadcast load from a VMEM
                # h-scratch; neutral on v5e/v6e (hidden under DMA).
                for i in range(d_in):
                    w_i = w_ref[i, :, sl].astype(jnp.float32)  # (d_out, chunk)
                    acc = acc + h[i:i + 1, :] * w_i            # sublane-bcast FMA
                h = acc if li == n_layers - 1 else activation(acc)
            o_ref[:, sl] = h.astype(o_ref.dtype)

        if n_chunks == 1:
            compute(slice(None))
        else:
            @pl.loop(0, n_chunks)
            def _(c):
                off = pl.multiple_of(c * chunk, _LANE)
                compute(pl.ds(off, chunk))

    return kernel


def _vmem_caps():
    """Per-generation VMEM sizing (v5e/v6e: 128 MiB; v7x: 64 MiB per TensorCore)."""
    try:
        cap = int(pltpu.get_tpu_info().vmem_capacity_bytes)
    except Exception:
        cap = 64 * 1024 * 1024                      # conservative fallback (= v7x per-TC)
    # footprint() already counts double-buffering; the 0.5 factor leaves headroom for
    # sublane padding of narrow bf16 tiles (d_out=8 decoder) + compiler internal scratch.
    block_budget = max(16 * 1024 * 1024, int(cap * 0.50))
    vmem_limit = max(32 * 1024 * 1024, int(cap * 0.80))
    return block_budget, vmem_limit


def _chunk_for(tb):
    return 256 if tb % 256 == 0 else _LANE


def _choose_trial_block(trials, in_dim, out_dim, layer_dims,
                        x_itemsize, w_itemsize, b_itemsize,
                        trial_block=None, min_grid_steps=4):
    block_budget, vmem_limit = _vmem_caps()
    padded_min = _round_up(trials, _LANE)
    max_feat = max([in_dim, out_dim] + [d for _, d in layer_dims])

    def footprint(tb):
        per_step = (in_dim + out_dim) * tb * x_itemsize
        for d_in, d_out in layer_dims:
            per_step += d_in * d_out * tb * w_itemsize + d_out * tb * b_itemsize
        # 2x: BlockSpec double-buffering of every streamed tile; plus the f32
        # per-chunk working set (h, acc, w_i, slack).
        return 2 * per_step + 4 * max_feat * _chunk_for(tb) * 4

    if trial_block is not None:
        tb = max(_LANE, _round_up(min(int(trial_block), padded_min), _LANE))
    else:
        # Auto-grow the lane-dense trial block until the per-step footprint fills the
        # VMEM budget -- the biggest single lever for this HBM-bound kernel.
        tb = _LANE
        while (tb * 2 <= min(_MAX_TRIAL_BLOCK, padded_min)
               and footprint(tb * 2) <= block_budget):
            tb *= 2
    # Shrink if over budget (covers an explicitly requested trial_block too).
    while tb > _LANE and footprint(tb) > block_budget:
        tb = max(_LANE, _round_up(tb // 2, _LANE))
    # Keep >= min_grid_steps grid steps when the trial count allows: the BlockSpec
    # pipeline needs a steady state, and v7x shards the "parallel" axis across its
    # 2 TensorCores (target >= 2 steps per core).
    if min_grid_steps > 1 and padded_min >= min_grid_steps * _LANE:
        tb = min(tb, _round_up(pl.cdiv(trials, min_grid_steps), _LANE))
    tb = max(_LANE, min(tb, padded_min))
    return tb, vmem_limit


def prepare_batchwise_dnn(weights, biases, *, trial_block=None,
                          param_dtype=jnp.bfloat16, x_itemsize=4,
                          min_grid_steps=4):
    """One-time relayout of BatchWiseDNN parameters for the Pallas kernel.

    weights : list of (trials, d_in_l, d_out_l)
    biases  : list of (trials, 1, d_out_l)

    Weights are cast to `param_dtype` (bf16 default: halves the HBM stream that
    dominates runtime); biases stay in their original dtype (negligible bytes,
    exact numerics).  Call this ONCE per parameter update and reuse the result
    across forward calls.
    """
    trials = int(weights[0].shape[0])
    n_layers = len(weights)
    layer_dims = [(int(w.shape[1]), int(w.shape[2])) for w in weights]
    in_dim, out_dim = layer_dims[0][0], layer_dims[-1][1]

    w_dtype = jnp.dtype(param_dtype) if param_dtype is not None else jnp.dtype(weights[0].dtype)
    b_dtype = jnp.dtype(biases[0].dtype)

    tb, vmem_limit = _choose_trial_block(
        trials, in_dim, out_dim, layer_dims,
        x_itemsize, w_dtype.itemsize, b_dtype.itemsize,
        trial_block=trial_block, min_grid_steps=min_grid_steps)

    padded_trials = _round_up(trials, tb)
    pad = padded_trials - trials
    chunk = _chunk_for(tb)

    flat_params = []
    in_specs = [pl.BlockSpec((in_dim, tb), lambda t: (0, t))]
    param_bytes = 0
    for (w, b), (d_in, d_out) in zip(zip(weights, biases), layer_dims):
        w_t = jnp.transpose(
            jnp.pad(w.astype(w_dtype), ((0, pad), (0, 0), (0, 0))), (1, 2, 0))   # (d_in, d_out, P)
        b_t = jnp.pad(b[:, 0, :].astype(b_dtype), ((0, pad), (0, 0))).T          # (d_out, P)
        flat_params += [w_t, b_t]
        in_specs.append(pl.BlockSpec((d_in, d_out, tb), lambda t: (0, 0, t)))
        in_specs.append(pl.BlockSpec((d_out, tb), lambda t: (0, t)))
        param_bytes += int(w_t.size) * w_dtype.itemsize + int(b_t.size) * b_dtype.itemsize

    flops = sum(2 * d_in * d_out + d_out for d_in, d_out in layer_dims) * padded_trials

    return dict(
        trials=trials, padded_trials=padded_trials, trial_block=tb,
        chunk=chunk, n_chunks=tb // chunk, n_layers=n_layers,
        in_dim=in_dim, out_dim=out_dim, layer_dims=layer_dims,
        flat_params=flat_params, in_specs=in_specs,
        param_bytes=param_bytes, flops=int(flops), vmem_limit=int(vmem_limit),
    )


def batchwise_dnn_forward(x, prepared, *, activation=lambda h: jnp.maximum(h, 0.0)):
    """Forward pass using pre-laid-out parameters from prepare_batchwise_dnn().

    x : (trials, in_dim)  ->  (trials, out_dim)
    """
    trials, in_dim = x.shape
    assert trials == prepared["trials"] and in_dim == prepared["in_dim"]
    tb = prepared["trial_block"]
    padded_trials = prepared["padded_trials"]
    out_dim = prepared["out_dim"]
    pad = padded_trials - trials

    x_itemsize = jnp.dtype(x.dtype).itemsize
    x_t = jnp.pad(x, ((0, pad), (0, 0))).T                                        # (in_dim, P)

    grid = (padded_trials // tb,)
    out_spec = pl.BlockSpec((out_dim, tb), lambda t: (0, t))

    bytes_accessed = (int(x_t.size) * x_itemsize + prepared["param_bytes"]
                      + out_dim * padded_trials * x_itemsize)

    fn = pl.pallas_call(
        _make_mlp_kernel(prepared["n_layers"], activation,
                         prepared["chunk"], prepared["n_chunks"]),
        out_shape=jax.ShapeDtypeStruct((out_dim, padded_trials), x.dtype),
        grid_spec=pltpu.PrefetchScalarGridSpec(
            num_scalar_prefetch=0,
            grid=grid,
            in_specs=prepared["in_specs"],
            out_specs=out_spec,
        ),
        compiler_params=pltpu.CompilerParams(
            dimension_semantics=("parallel",),
            vmem_limit_bytes=prepared["vmem_limit"],
        ),
        cost_estimate=pl.CostEstimate(
            flops=prepared["flops"], transcendentals=0,
            bytes_accessed=int(bytes_accessed)),
    )
    out_t = fn(x_t, *prepared["flat_params"])     # (out_dim, P), lane-dense stores
    return out_t[:, :trials].T                    # (trials, out_dim)


def batchwise_dnn_pallas(x, weights, biases, **kwargs):
    """Convenience one-shot wrapper.  For real use, call prepare_batchwise_dnn()
    once and reuse the prepared layout across forward passes."""
    activation = kwargs.pop("activation", lambda h: jnp.maximum(h, 0.0))
    prepared = prepare_batchwise_dnn(weights, biases, **kwargs)
    return batchwise_dnn_forward(x, prepared, activation=activation)


def batchwise_dnn_ref(x, weights, biases):
    """Pure-JAX reference mirroring the PyTorch forward."""
    h = x[:, None, :]                                      # unsqueeze(1)
    n_layers = len(weights)
    for li, (w, b) in enumerate(zip(weights, biases)):
        h = jnp.einsum("tri,tio->tro", h, w) + b           # torch.bmm + bias
        if li < n_layers - 1:
            h = jnp.maximum(h, 0.0)                        # torch.relu
    return h[:, 0, :]                                      # squeeze(1)


def init_params(key, trials, in_dim, hidden_dim, out_dim, dtype=jnp.float32):
    """Deterministic init matching BatchWiseDNN.__init__ (torch.randn / sqrt(fan_in))."""
    weights, biases = [], []
    dims = [in_dim] + list(hidden_dim) + [out_dim]
    for li in range(len(dims) - 1):
        d_in, d_out = dims[li], dims[li + 1]
        key, kw, kb = jax.random.split(key, 3)
        weights.append(jax.random.normal(kw, (trials, d_in, d_out), dtype) / d_in ** 0.5)
        biases.append(jax.random.normal(kb, (trials, 1, d_out), dtype) / d_in ** 0.5)
    return weights, biases


if __name__ == "__main__":
    key = jax.random.PRNGKey(0)

    # --- Case 1: small shapes consistent with the module's forward. ------------------
    trials, in_dim, hidden_dim, out_dim = 16, 16, (32, 32), 8
    key, kx = jax.random.split(key)
    x = jax.random.normal(kx, (trials, in_dim), jnp.float32)
    weights, biases = init_params(key, trials, in_dim, hidden_dim, out_dim)

    prepared = prepare_batchwise_dnn(weights, biases)        # one-time relayout/cast
    out = jax.block_until_ready(batchwise_dnn_forward(x, prepared))

    # Reference consumes the same bf16-quantized weights (upcast to f32) and f32
    # biases -- exactly what the kernel streams from HBM; both accumulate in f32.
    wq = [w.astype(jnp.bfloat16).astype(jnp.float32) for w in weights]
    ref = batchwise_dnn_ref(x, wq, biases)
    assert out.shape == (trials, out_dim)
    assert jnp.allclose(out, ref, atol=1e-4, rtol=1e-4), "case 1: mismatch vs reference"

    # --- Case 2: non-multiple-of-128 trial count, multi-chunk + multi-step path. ------
    trials2 = 600
    key, kx2, kp2 = jax.random.split(key, 3)
    x2 = jax.random.normal(kx2, (trials2, in_dim), jnp.float32)
    weights2, biases2 = init_params(kp2, trials2, in_dim, hidden_dim, out_dim)
    prepared2 = prepare_batchwise_dnn(weights2, biases2, trial_block=512, min_grid_steps=1)
    out2 = jax.block_until_ready(batchwise_dnn_forward(x2, prepared2))
    wq2 = [w.astype(jnp.bfloat16).astype(jnp.float32) for w in weights2]
    ref2 = batchwise_dnn_ref(x2, wq2, biases2)
    assert out2.shape == (trials2, out_dim)
    assert jnp.allclose(out2, ref2, atol=1e-4, rtol=1e-4), "case 2: mismatch vs reference"

    print("KERNEL_OK")
</pallas_src>

<mosaic_0001>
module attributes {stable_mosaic.version = 11 : i64} {
  func.func @kernel(%arg0: i32, %arg1: memref<16x128xf32, #tpu.memory_space<vmem>>, %arg2: memref<16x32x128xbf16, #tpu.memory_space<vmem>>, %arg3: memref<32x128xf32, #tpu.memory_space<vmem>>, %arg4: memref<32x32x128xbf16, #tpu.memory_space<vmem>>, %arg5: memref<32x128xf32, #tpu.memory_space<vmem>>, %arg6: memref<32x8x128xbf16, #tpu.memory_space<vmem>>, %arg7: memref<8x128xf32, #tpu.memory_space<vmem>>, %arg8: memref<8x128xf32, #tpu.memory_space<vmem>>) attributes {dimension_semantics = [#tpu.dimension_semantics<parallel>], iteration_bounds = array<i64: 1>, scalar_prefetch = 0 : i64, scratch_operands = 0 : i64, tpu.core_type = #tpu.core_type<tc>, window_params = [{transform_indices = @transform_0, window_bounds = array<i64: 16, 128>}, {transform_indices = @transform_1, window_bounds = array<i64: 16, 32, 128>}, {transform_indices = @transform_2, window_bounds = array<i64: 32, 128>}, {transform_indices = @transform_3, window_bounds = array<i64: 32, 32, 128>}, {transform_indices = @transform_4, window_bounds = array<i64: 32, 128>}, {transform_indices = @transform_5, window_bounds = array<i64: 32, 8, 128>}, {transform_indices = @transform_6, window_bounds = array<i64: 8, 128>}, {transform_indices = @transform_7, window_bounds = array<i64: 8, 128>}]} {
    %c0 = arith.constant 0 : index
    %c0_0 = arith.constant 0 : index
    %0 = vector.load %arg1[%c0, %c0_0] : memref<16x128xf32, #tpu.memory_space<vmem>>, vector<16x128xf32>
    %c0_1 = arith.constant 0 : index
    %c0_2 = arith.constant 0 : index
    %1 = vector.load %arg3[%c0_1, %c0_2] : memref<32x128xf32, #tpu.memory_space<vmem>>, vector<32x128xf32>
    %c0_3 = arith.constant 0 : index
    %c0_4 = arith.constant 0 : index
    %c0_5 = arith.constant 0 : index
    %2 = vector.load %arg2[%c0_3, %c0_4, %c0_5] : memref<16x32x128xbf16, #tpu.memory_space<vmem>>, vector<1x32x128xbf16>
    %3 = vector.shape_cast %2 : vector<1x32x128xbf16> to vector<32x128xbf16>
    %4 = arith.extf %3 : vector<32x128xbf16> to vector<32x128xf32>
    %5 = vector.extract_strided_slice %0 {offsets = [0, 0], sizes = [1, 128], strides = [1, 1]} : vector<16x128xf32> to vector<1x128xf32>
    %6 = vector.broadcast %5 : vector<1x128xf32> to vector<32x128xf32>
    %7 = arith.mulf %6, %4 : vector<32x128xf32>
    %8 = arith.addf %1, %7 : vector<32x128xf32>
    %c1 = arith.constant 1 : index
    %c0_6 = arith.constant 0 : index
    %c0_7 = arith.constant 0 : index
    %9 = vector.load %arg2[%c1, %c0_6, %c0_7] : memref<16x32x128xbf16, #tpu.memory_space<vmem>>, vector<1x32x128xbf16>
    %10 = vector.shape_cast %9 : vector<1x32x128xbf16> to vector<32x128xbf16>
    %11 = arith.extf %10 : vector<32x128xbf16> to vector<32x128xf32>
    %12 = vector.extract_strided_slice %0 {offsets = [1, 0], sizes = [1, 128], strides = [1, 1]} : vector<16x128xf32> to vector<1x128xf32>
    %13 = vector.broadcast %12 : vector<1x128xf32> to vector<32x128xf32>
    %14 = arith.mulf %13, %11 : vector<32x128xf32>
    %15 = arith.addf %8, %14 : vector<32x128xf32>
    %c2 = arith.constant 2 : index
    %c0_8 = arith.constant 0 : index
    %c0_9 = arith.constant 0 : index
    %16 = vector.load %arg2[%c2, %c0_8, %c0_9] : memref<16x32x128xbf16, #tpu.memory_space<vmem>>, vector<1x32x128xbf16>
    %17 = vector.shape_cast %16 : vector<1x32x128xbf16> to vector<32x128xbf16>
    %18 = arith.extf %17 : vector<32x128xbf16> to vector<32x128xf32>
    %19 = vector.extract_strided_slice %0 {offsets = [2, 0], sizes = [1, 128], strides = [1, 1]} : vector<16x128xf32> to vector<1x128xf32>
    %20 = vector.broadcast %19 : vector<1x128xf32> to vector<32x128xf32>
    %21 = arith.mulf %20, %18 : vector<32x128xf32>
    %22 = arith.addf %15, %21 : vector<32x128xf32>
    %c3 = arith.constant 3 : index
    %c0_10 = arith.constant 0 : index
    %c0_11 = arith.constant 0 : index
    %23 = vector.load %arg2[%c3, %c0_10, %c0_11] : memref<16x32x128xbf16, #tpu.memory_space<vmem>>, vector<1x32x128xbf16>
    %24 = vector.shape_cast %23 : vector<1x32x128xbf16> to vector<32x128xbf16>
    %25 = arith.extf %24 : vector<32x128xbf16> to vector<32x128xf32>
    %26 = vector.extract_strided_slice %0 {offsets = [3, 0], sizes = [1, 128], strides = [1, 1]} : vector<16x128xf32> to vector<1x128xf32>
    %27 = vector.broadcast %26 : vector<1x128xf32> to vector<32x128xf32>
    %28 = arith.mulf %27, %25 : vector<32x128xf32>
    %29 = arith.addf %22, %28 : vector<32x128xf32>
    %c4 = arith.constant 4 : index
    %c0_12 = arith.constant 0 : index
    %c0_13 = arith.constant 0 : index
    %30 = vector.load %arg2[%c4, %c0_12, %c0_13] : memref<16x32x128xbf16, #tpu.memory_space<vmem>>, vector<1x32x128xbf16>
    %31 = vector.shape_cast %30 : vector<1x32x128xbf16> to vector<32x128xbf16>
    %32 = arith.extf %31 : vector<32x128xbf16> to vector<32x128xf32>
    %33 = vector.extract_strided_slice %0 {offsets = [4, 0], sizes = [1, 128], strides = [1, 1]} : vector<16x128xf32> to vector<1x128xf32>
    %34 = vector.broadcast %33 : vector<1x128xf32> to vector<32x128xf32>
    %35 = arith.mulf %34, %32 : vector<32x128xf32>
    %36 = arith.addf %29, %35 : vector<32x128xf32>
    %c5 = arith.constant 5 : index
    %c0_14 = arith.constant 0 : index
    %c0_15 = arith.constant 0 : index
    %37 = vector.load %arg2[%c5, %c0_14, %c0_15] : memref<16x32x128xbf16, #tpu.memory_space<vmem>>, vector<1x32x128xbf16>
    %38 = vector.shape_cast %37 : vector<1x32x128xbf16> to vector<32x128xbf16>
    %39 = arith.extf %38 : vector<32x128xbf16> to vector<32x128xf32>
    %40 = vector.extract_strided_slice %0 {offsets = [5, 0], sizes = [1, 128], strides = [1, 1]} : vector<16x128xf32> to vector<1x128xf32>
    %41 = vector.broadcast %40 : vector<1x128xf32> to vector<32x128xf32>
    %42 = arith.mulf %41, %39 : vector<32x128xf32>
    %43 = arith.addf %36, %42 : vector<32x128xf32>
    %c6 = arith.constant 6 : index
    %c0_16 = arith.constant 0 : index
    %c0_17 = arith.constant 0 : index
    %44 = vector.load %arg2[%c6, %c0_16, %c0_17] : memref<16x32x128xbf16, #tpu.memory_space<vmem>>, vector<1x32x128xbf16>
    %45 = vector.shape_cast %44 : vector<1x32x128xbf16> to vector<32x128xbf16>
    %46 = arith.extf %45 : vector<32x128xbf16> to vector<32x128xf32>
    %47 = vector.extract_strided_slice %0 {offsets = [6, 0], sizes = [1, 128], strides = [1, 1]} : vector<16x128xf32> to vector<1x128xf32>
    %48 = vector.broadcast %47 : vector<1x128xf32> to vector<32x128xf32>
    %49 = arith.mulf %48, %46 : vector<32x128xf32>
    %50 = arith.addf %43, %49 : vector<32x128xf32>
    %c7 = arith.constant 7 : index
    %c0_18 = arith.constant 0 : index
    %c0_19 = arith.constant 0 : index
    %51 = vector.load %arg2[%c7, %c0_18, %c0_19] : memref<16x32x128xbf16, #tpu.memory_space<vmem>>, vector<1x32x128xbf16>
    %52 = vector.shape_cast %51 : vector<1x32x128xbf16> to vector<32x128xbf16>
    %53 = arith.extf %52 : vector<32x128xbf16> to vector<32x128xf32>
    %54 = vector.extract_strided_slice %0 {offsets = [7, 0], sizes = [1, 128], strides = [1, 1]} : vector<16x128xf32> to vector<1x128xf32>
    %55 = vector.broadcast %54 : vector<1x128xf32> to vector<32x128xf32>
    %56 = arith.mulf %55, %53 : vector<32x128xf32>
    %57 = arith.addf %50, %56 : vector<32x128xf32>
    %c8 = arith.constant 8 : index
    %c0_20 = arith.constant 0 : index
    %c0_21 = arith.constant 0 : index
    %58 = vector.load %arg2[%c8, %c0_20, %c0_21] : memref<16x32x128xbf16, #tpu.memory_space<vmem>>, vector<1x32x128xbf16>
    %59 = vector.shape_cast %58 : vector<1x32x128xbf16> to vector<32x128xbf16>
    %60 = arith.extf %59 : vector<32x128xbf16> to vector<32x128xf32>
    %61 = vector.extract_strided_slice %0 {offsets = [8, 0], sizes = [1, 128], strides = [1, 1]} : vector<16x128xf32> to vector<1x128xf32>
    %62 = vector.broadcast %61 : vector<1x128xf32> to vector<32x128xf32>
    %63 = arith.mulf %62, %60 : vector<32x128xf32>
    %64 = arith.addf %57, %63 : vector<32x128xf32>
    %c9 = arith.constant 9 : index
    %c0_22 = arith.constant 0 : index
    %c0_23 = arith.constant 0 : index
    %65 = vector.load %arg2[%c9, %c0_22, %c0_23] : memref<16x32x128xbf16, #tpu.memory_space<vmem>>, vector<1x32x128xbf16>
    %66 = vector.shape_cast %65 : vector<1x32x128xbf16> to vector<32x128xbf16>
    %67 = arith.extf %66 : vector<32x128xbf16> to vector<32x128xf32>
    %68 = vector.extract_strided_slice %0 {offsets = [9, 0], sizes = [1, 128], strides = [1, 1]} : vector<16x128xf32> to vector<1x128xf32>
    %69 = vector.broadcast %68 : vector<1x128xf32> to vector<32x128xf32>
    %70 = arith.mulf %69, %67 : vector<32x128xf32>
    %71 = arith.addf %64, %70 : vector<32x128xf32>
    %c10 = arith.constant 10 : index
    %c0_24 = arith.constant 0 : index
    %c0_25 = arith.constant 0 : index
    %72 = vector.load %arg2[%c10, %c0_24, %c0_25] : memref<16x32x128xbf16, #tpu.memory_space<vmem>>, vector<1x32x128xbf16>
    %73 = vector.shape_cast %72 : vector<1x32x128xbf16> to vector<32x128xbf16>
    %74 = arith.extf %73 : vector<32x128xbf16> to vector<32x128xf32>
    %75 = vector.extract_strided_slice %0 {offsets = [10, 0], sizes = [1, 128], strides = [1, 1]} : vector<16x128xf32> to vector<1x128xf32>
    %76 = vector.broadcast %75 : vector<1x128xf32> to vector<32x128xf32>
    %77 = arith.mulf %76, %74 : vector<32x128xf32>
    %78 = arith.addf %71, %77 : vector<32x128xf32>
    %c11 = arith.constant 11 : index
    %c0_26 = arith.constant 0 : index
    %c0_27 = arith.constant 0 : index
    %79 = vector.load %arg2[%c11, %c0_26, %c0_27] : memref<16x32x128xbf16, #tpu.memory_space<vmem>>, vector<1x32x128xbf16>
    %80 = vector.shape_cast %79 : vector<1x32x128xbf16> to vector<32x128xbf16>
    %81 = arith.extf %80 : vector<32x128xbf16> to vector<32x128xf32>
    %82 = vector.extract_strided_slice %0 {offsets = [11, 0], sizes = [1, 128], strides = [1, 1]} : vector<16x128xf32> to vector<1x128xf32>
    %83 = vector.broadcast %82 : vector<1x128xf32> to vector<32x128xf32>
    %84 = arith.mulf %83, %81 : vector<32x128xf32>
    %85 = arith.addf %78, %84 : vector<32x128xf32>
    %c12 = arith.constant 12 : index
    %c0_28 = arith.constant 0 : index
    %c0_29 = arith.constant 0 : index
    %86 = vector.load %arg2[%c12, %c0_28, %c0_29] : memref<16x32x128xbf16, #tpu.memory_space<vmem>>, vector<1x32x128xbf16>
    %87 = vector.shape_cast %86 : vector<1x32x128xbf16> to vector<32x128xbf16>
    %88 = arith.extf %87 : vector<32x128xbf16> to vector<32x128xf32>
    %89 = vector.extract_strided_slice %0 {offsets = [12, 0], sizes = [1, 128], strides = [1, 1]} : vector<16x128xf32> to vector<1x128xf32>
    %90 = vector.broadcast %89 : vector<1x128xf32> to vector<32x128xf32>
    %91 = arith.mulf %90, %88 : vector<32x128xf32>
    %92 = arith.addf %85, %91 : vector<32x128xf32>
    %c13 = arith.constant 13 : index
    %c0_30 = arith.constant 0 : index
    %c0_31 = arith.constant 0 : index
    %93 = vector.load %arg2[%c13, %c0_30, %c0_31] : memref<16x32x128xbf16, #tpu.memory_space<vmem>>, vector<1x32x128xbf16>
    %94 = vector.shape_cast %93 : vector<1x32x128xbf16> to vector<32x128xbf16>
    %95 = arith.extf %94 : vector<32x128xbf16> to vector<32x128xf32>
    %96 = vector.extract_strided_slice %0 {offsets = [13, 0], sizes = [1, 128], strides = [1, 1]} : vector<16x128xf32> to vector<1x128xf32>
    %97 = vector.broadcast %96 : vector<1x128xf32> to vector<32x128xf32>
    %98 = arith.mulf %97, %95 : vector<32x128xf32>
    %99 = arith.addf %92, %98 : vector<32x128xf32>
    %c14 = arith.constant 14 : index
    %c0_32 = arith.constant 0 : index
    %c0_33 = arith.constant 0 : index
    %100 = vector.load %arg2[%c14, %c0_32, %c0_33] : memref<16x32x128xbf16, #tpu.memory_space<vmem>>, vector<1x32x128xbf16>
    %101 = vector.shape_cast %100 : vector<1x32x128xbf16> to vector<32x128xbf16>
    %102 = arith.extf %101 : vector<32x128xbf16> to vector<32x128xf32>
    %103 = vector.extract_strided_slice %0 {offsets = [14, 0], sizes = [1, 128], strides = [1, 1]} : vector<16x128xf32> to vector<1x128xf32>
    %104 = vector.broadcast %103 : vector<1x128xf32> to vector<32x128xf32>
    %105 = arith.mulf %104, %102 : vector<32x128xf32>
    %106 = arith.addf %99, %105 : vector<32x128xf32>
    %c15 = arith.constant 15 : index
    %c0_34 = arith.constant 0 : index
    %c0_35 = arith.constant 0 : index
    %107 = vector.load %arg2[%c15, %c0_34, %c0_35] : memref<16x32x128xbf16, #tpu.memory_space<vmem>>, vector<1x32x128xbf16>
    %108 = vector.shape_cast %107 : vector<1x32x128xbf16> to vector<32x128xbf16>
    %109 = arith.extf %108 : vector<32x128xbf16> to vector<32x128xf32>
    %110 = vector.extract_strided_slice %0 {offsets = [15, 0], sizes = [1, 128], strides = [1, 1]} : vector<16x128xf32> to vector<1x128xf32>
    %111 = vector.broadcast %110 : vector<1x128xf32> to vector<32x128xf32>
    %112 = arith.mulf %111, %109 : vector<32x128xf32>
    %113 = arith.addf %106, %112 : vector<32x128xf32>
    %cst = arith.constant 0.000000e+00 : f32
    %114 = vector.broadcast %cst : f32 to vector<32x128xf32>
    %115 = arith.maximumf %113, %114 : vector<32x128xf32>
    %c0_36 = arith.constant 0 : index
    %c0_37 = arith.constant 0 : index
    %116 = vector.load %arg5[%c0_36, %c0_37] : memref<32x128xf32, #tpu.memory_space<vmem>>, vector<32x128xf32>
    %c0_38 = arith.constant 0 : index
    %c0_39 = arith.constant 0 : index
    %c0_40 = arith.constant 0 : index
    %117 = vector.load %arg4[%c0_38, %c0_39, %c0_40] : memref<32x32x128xbf16, #tpu.memory_space<vmem>>, vector<1x32x128xbf16>
    %118 = vector.shape_cast %117 : vector<1x32x128xbf16> to vector<32x128xbf16>
    %119 = arith.extf %118 : vector<32x128xbf16> to vector<32x128xf32>
    %120 = vector.extract_strided_slice %115 {offsets = [0, 0], sizes = [1, 128], strides = [1, 1]} : vector<32x128xf32> to vector<1x128xf32>
    %121 = vector.broadcast %120 : vector<1x128xf32> to vector<32x128xf32>
    %122 = arith.mulf %121, %119 : vector<32x128xf32>
    %123 = arith.addf %116, %122 : vector<32x128xf32>
    %c1_41 = arith.constant 1 : index
    %c0_42 = arith.constant 0 : index
    %c0_43 = arith.constant 0 : index
    %124 = vector.load %arg4[%c1_41, %c0_42, %c0_43] : memref<32x32x128xbf16, #tpu.memory_space<vmem>>, vector<1x32x128xbf16>
    %125 = vector.shape_cast %124 : vector<1x32x128xbf16> to vector<32x128xbf16>
    %126 = arith.extf %125 : vector<32x128xbf16> to vector<32x128xf32>
    %127 = vector.extract_strided_slice %115 {offsets = [1, 0], sizes = [1, 128], strides = [1, 1]} : vector<32x128xf32> to vector<1x128xf32>
    %128 = vector.broadcast %127 : vector<1x128xf32> to vector<32x128xf32>
    %129 = arith.mulf %128, %126 : vector<32x128xf32>
    %130 = arith.addf %123, %129 : vector<32x128xf32>
    %c2_44 = arith.constant 2 : index
    %c0_45 = arith.constant 0 : index
    %c0_46 = arith.constant 0 : index
    %131 = vector.load %arg4[%c2_44, %c0_45, %c0_46] : memref<32x32x128xbf16, #tpu.memory_space<vmem>>, vector<1x32x128xbf16>
    %132 = vector.shape_cast %131 : vector<1x32x128xbf16> to vector<32x128xbf16>
    %133 = arith.extf %132 : vector<32x128xbf16> to vector<32x128xf32>
    %134 = vector.extract_strided_slice %115 {offsets = [2, 0], sizes = [1, 128], strides = [1, 1]} : vector<32x128xf32> to vector<1x128xf32>
    %135 = vector.broadcast %134 : vector<1x128xf32> to vector<32x128xf32>
    %136 = arith.mulf %135, %133 : vector<32x128xf32>
    %137 = arith.addf %130, %136 : vector<32x128xf32>
    %c3_47 = arith.constant 3 : index
    %c0_48 = arith.constant 0 : index
    %c0_49 = arith.constant 0 : index
    %138 = vector.load %arg4[%c3_47, %c0_48, %c0_49] : memref<32x32x128xbf16, #tpu.memory_space<vmem>>, vector<1x32x128xbf16>
    %139 = vector.shape_cast %138 : vector<1x32x128xbf16> to vector<32x128xbf16>
    %140 = arith.extf %139 : vector<32x128xbf16> to vector<32x128xf32>
    %141 = vector.extract_strided_slice %115 {offsets = [3, 0], sizes = [1, 128], strides = [1, 1]} : vector<32x128xf32> to vector<1x128xf32>
    %142 = vector.broadcast %141 : vector<1x128xf32> to vector<32x128xf32>
    %143 = arith.mulf %142, %140 : vector<32x128xf32>
    %144 = arith.addf %137, %143 : vector<32x128xf32>
    %c4_50 = arith.constant 4 : index
    %c0_51 = arith.constant 0 : index
    %c0_52 = arith.constant 0 : index
    %145 = vector.load %arg4[%c4_50, %c0_51, %c0_52] : memref<32x32x128xbf16, #tpu.memory_space<vmem>>, vector<1x32x128xbf16>
    %146 = vector.shape_cast %145 : vector<1x32x128xbf16> to vector<32x128xbf16>
    %147 = arith.extf %146 : vector<32x128xbf16> to vector<32x128xf32>
    %148 = vector.extract_strided_slice %115 {offsets = [4, 0], sizes = [1, 128], strides = [1, 1]} : vector<32x128xf32> to vector<1x128xf32>
    %149 = vector.broadcast %148 : vector<1x128xf32> to vector<32x128xf32>
    %150 = arith.mulf %149, %147 : vector<32x128xf32>
    %151 = arith.addf %144, %150 : vector<32x128xf32>
    %c5_53 = arith.constant 5 : index
    %c0_54 = arith.constant 0 : index
    %c0_55 = arith.constant 0 : index
    %152 = vector.load %arg4[%c5_53, %c0_54, %c0_55] : memref<32x32x128xbf16, #tpu.memory_space<vmem>>, vector<1x32x128xbf16>
    %153 = vector.shape_cast %152 : vector<1x32x128xbf16> to vector<32x128xbf16>
    %154 = arith.extf %153 : vector<32x128xbf16> to vector<32x128xf32>
    %155 = vector.extract_strided_slice %115 {offsets = [5, 0], sizes = [1, 128], strides = [1, 1]} : vector<32x128xf32> to vector<1x128xf32>
    %156 = vector.broadcast %155 : vector<1x128xf32> to vector<32x128xf32>
    %157 = arith.mulf %156, %154 : vector<32x128xf32>
    %158 = arith.addf %151, %157 : vector<32x128xf32>
    %c6_56 = arith.constant 6 : index
    %c0_57 = arith.constant 0 : index
    %c0_58 = arith.constant 0 : index
    %159 = vector.load %arg4[%c6_56, %c0_57, %c0_58] : memref<32x32x128xbf16, #tpu.memory_space<vmem>>, vector<1x32x128xbf16>
    %160 = vector.shape_cast %159 : vector<1x32x128xbf16> to vector<32x128xbf16>
    %161 = arith.extf %160 : vector<32x128xbf16> to vector<32x128xf32>
    %162 = vector.extract_strided_slice %115 {offsets = [6, 0], sizes = [1, 128], strides = [1, 1]} : vector<32x128xf32> to vector<1x128xf32>
    %163 = vector.broadcast %162 : vector<1x128xf32> to vector<32x128xf32>
    %164 = arith.mulf %163, %161 : vector<32x128xf32>
    %165 = arith.addf %158, %164 : vector<32x128xf32>
    %c7_59 = arith.constant 7 : index
    %c0_60 = arith.constant 0 : index
    %c0_61 = arith.constant 0 : index
    %166 = vector.load %arg4[%c7_59, %c0_60, %c0_61] : memref<32x32x128xbf16, #tpu.memory_space<vmem>>, vector<1x32x128xbf16>
    %167 = vector.shape_cast %166 : vector<1x32x128xbf16> to vector<32x128xbf16>
    %168 = arith.extf %167 : vector<32x128xbf16> to vector<32x128xf32>
    %169 = vector.extract_strided_slice %115 {offsets = [7, 0], sizes = [1, 128], strides = [1, 1]} : vector<32x128xf32> to vector<1x128xf32>
    %170 = vector.broadcast %169 : vector<1x128xf32> to vector<32x128xf32>
    %171 = arith.mulf %170, %168 : vector<32x128xf32>
    %172 = arith.addf %165, %171 : vector<32x128xf32>
    %c8_62 = arith.constant 8 : index
    %c0_63 = arith.constant 0 : index
    %c0_64 = arith.constant 0 : index
    %173 = vector.load %arg4[%c8_62, %c0_63, %c0_64] : memref<32x32x128xbf16, #tpu.memory_space<vmem>>, vector<1x32x128xbf16>
    %174 = vector.shape_cast %173 : vector<1x32x128xbf16> to vector<32x128xbf16>
    %175 = arith.extf %174 : vector<32x128xbf16> to vector<32x128xf32>
    %176 = vector.extract_strided_slice %115 {offsets = [8, 0], sizes = [1, 128], strides = [1, 1]} : vector<32x128xf32> to vector<1x128xf32>
    %177 = vector.broadcast %176 : vector<1x128xf32> to vector<32x128xf32>
    %178 = arith.mulf %177, %175 : vector<32x128xf32>
    %179 = arith.addf %172, %178 : vector<32x128xf32>
    %c9_65 = arith.constant 9 : index
    %c0_66 = arith.constant 0 : index
    %c0_67 = arith.constant 0 : index
    %180 = vector.load %arg4[%c9_65, %c0_66, %c0_67] : memref<32x32x128xbf16, #tpu.memory_space<vmem>>, vector<1x32x128xbf16>
    %181 = vector.shape_cast %180 : vector<1x32x128xbf16> to vector<32x128xbf16>
    %182 = arith.extf %181 : vector<32x128xbf16> to vector<32x128xf32>
    %183 = vector.extract_strided_slice %115 {offsets = [9, 0], sizes = [1, 128], strides = [1, 1]} : vector<32x128xf32> to vector<1x128xf32>
    %184 = vector.broadcast %183 : vector<1x128xf32> to vector<32x128xf32>
    %185 = arith.mulf %184, %182 : vector<32x128xf32>
    %186 = arith.addf %179, %185 : vector<32x128xf32>
    %c10_68 = arith.constant 10 : index
    %c0_69 = arith.constant 0 : index
    %c0_70 = arith.constant 0 : index
    %187 = vector.load %arg4[%c10_68, %c0_69, %c0_70] : memref<32x32x128xbf16, #tpu.memory_space<vmem>>, vector<1x32x128xbf16>
    %188 = vector.shape_cast %187 : vector<1x32x128xbf16> to vector<32x128xbf16>
    %189 = arith.extf %188 : vector<32x128xbf16> to vector<32x128xf32>
    %190 = vector.extract_strided_slice %115 {offsets = [10, 0], sizes = [1, 128], strides = [1, 1]} : vector<32x128xf32> to vector<1x128xf32>
    %191 = vector.broadcast %190 : vector<1x128xf32> to vector<32x128xf32>
    %192 = arith.mulf %191, %189 : vector<32x128xf32>
    %193 = arith.addf %186, %192 : vector<32x128xf32>
    %c11_71 = arith.constant 11 : index
    %c0_72 = arith.constant 0 : index
    %c0_73 = arith.constant 0 : index
    %194 = vector.load %arg4[%c11_71, %c0_72, %c0_73] : memref<32x32x128xbf16, #tpu.memory_space<vmem>>, vector<1x32x128xbf16>
    %195 = vector.shape_cast %194 : vector<1x32x128xbf16> to vector<32x128xbf16>
    %196 = arith.extf %195 : vector<32x128xbf16> to vector<32x128xf32>
    %197 = vector.extract_strided_slice %115 {offsets = [11, 0], sizes = [1, 128], strides = [1, 1]} : vector<32x128xf32> to vector<1x128xf32>
    %198 = vector.broadcast %197 : vector<1x128xf32> to vector<32x128xf32>
    %199 = arith.mulf %198, %196 : vector<32x128xf32>
    %200 = arith.addf %193, %199 : vector<32x128xf32>
    %c12_74 = arith.constant 12 : index
    %c0_75 = arith.constant 0 : index
    %c0_76 = arith.constant 0 : index
    %201 = vector.load %arg4[%c12_74, %c0_75, %c0_76] : memref<32x32x128xbf16, #tpu.memory_space<vmem>>, vector<1x32x128xbf16>
    %202 = vector.shape_cast %201 : vector<1x32x128xbf16> to vector<32x128xbf16>
    %203 = arith.extf %202 : vector<32x128xbf16> to vector<32x128xf32>
    %204 = vector.extract_strided_slice %115 {offsets = [12, 0], sizes = [1, 128], strides = [1, 1]} : vector<32x128xf32> to vector<1x128xf32>
    %205 = vector.broadcast %204 : vector<1x128xf32> to vector<32x128xf32>
    %206 = arith.mulf %205, %203 : vector<32x128xf32>
    %207 = arith.addf %200, %206 : vector<32x128xf32>
    %c13_77 = arith.constant 13 : index
    %c0_78 = arith.constant 0 : index
    %c0_79 = arith.constant 0 : index
    %208 = vector.load %arg4[%c13_77, %c0_78, %c0_79] : memref<32x32x128xbf16, #tpu.memory_space<vmem>>, vector<1x32x128xbf16>
    %209 = vector.shape_cast %208 : vector<1x32x128xbf16> to vector<32x128xbf16>
    %210 = arith.extf %209 : vector<32x128xbf16> to vector<32x128xf32>
    %211 = vector.extract_strided_slice %115 {offsets = [13, 0], sizes = [1, 128], strides = [1, 1]} : vector<32x128xf32> to vector<1x128xf32>
    %212 = vector.broadcast %211 : vector<1x128xf32> to vector<32x128xf32>
    %213 = arith.mulf %212, %210 : vector<32x128xf32>
    %214 = arith.addf %207, %213 : vector<32x128xf32>
    %c14_80 = arith.constant 14 : index
    %c0_81 = arith.constant 0 : index
    %c0_82 = arith.constant 0 : index
    %215 = vector.load %arg4[%c14_80, %c0_81, %c0_82] : memref<32x32x128xbf16, #tpu.memory_space<vmem>>, vector<1x32x128xbf16>
    %216 = vector.shape_cast %215 : vector<1x32x128xbf16> to vector<32x128xbf16>
    %217 = arith.extf %216 : vector<32x128xbf16> to vector<32x128xf32>
    %218 = vector.extract_strided_slice %115 {offsets = [14, 0], sizes = [1, 128], strides = [1, 1]} : vector<32x128xf32> to vector<1x128xf32>
    %219 = vector.broadcast %218 : vector<1x128xf32> to vector<32x128xf32>
    %220 = arith.mulf %219, %217 : vector<32x128xf32>
    %221 = arith.addf %214, %220 : vector<32x128xf32>
    %c15_83 = arith.constant 15 : index
    %c0_84 = arith.constant 0 : index
    %c0_85 = arith.constant 0 : index
    %222 = vector.load %arg4[%c15_83, %c0_84, %c0_85] : memref<32x32x128xbf16, #tpu.memory_space<vmem>>, vector<1x32x128xbf16>
    %223 = vector.shape_cast %222 : vector<1x32x128xbf16> to vector<32x128xbf16>
    %224 = arith.extf %223 : vector<32x128xbf16> to vector<32x128xf32>
    %225 = vector.extract_strided_slice %115 {offsets = [15, 0], sizes = [1, 128], strides = [1, 1]} : vector<32x128xf32> to vector<1x128xf32>
    %226 = vector.broadcast %225 : vector<1x128xf32> to vector<32x128xf32>
    %227 = arith.mulf %226, %224 : vector<32x128xf32>
    %228 = arith.addf %221, %227 : vector<32x128xf32>
    %c16 = arith.constant 16 : index
    %c0_86 = arith.constant 0 : index
    %c0_87 = arith.constant 0 : index
    %229 = vector.load %arg4[%c16, %c0_86, %c0_87] : memref<32x32x128xbf16, #tpu.memory_space<vmem>>, vector<1x32x128xbf16>
    %230 = vector.shape_cast %229 : vector<1x32x128xbf16> to vector<32x128xbf16>
    %231 = arith.extf %230 : vector<32x128xbf16> to vector<32x128xf32>
    %232 = vector.extract_strided_slice %115 {offsets = [16, 0], sizes = [1, 128], strides = [1, 1]} : vector<32x128xf32> to vector<1x128xf32>
    %233 = vector.broadcast %232 : vector<1x128xf32> to vector<32x128xf32>
    %234 = arith.mulf %233, %231 : vector<32x128xf32>
    %235 = arith.addf %228, %234 : vector<32x128xf32>
    %c17 = arith.constant 17 : index
    %c0_88 = arith.constant 0 : index
    %c0_89 = arith.constant 0 : index
    %236 = vector.load %arg4[%c17, %c0_88, %c0_89] : memref<32x32x128xbf16, #tpu.memory_space<vmem>>, vector<1x32x128xbf16>
    %237 = vector.shape_cast %236 : vector<1x32x128xbf16> to vector<32x128xbf16>
    %238 = arith.extf %237 : vector<32x128xbf16> to vector<32x128xf32>
    %239 = vector.extract_strided_slice %115 {offsets = [17, 0], sizes = [1, 128], strides = [1, 1]} : vector<32x128xf32> to vector<1x128xf32>
    %240 = vector.broadcast %239 : vector<1x128xf32> to vector<32x128xf32>
    %241 = arith.mulf %240, %238 : vector<32x128xf32>
    %242 = arith.addf %235, %241 : vector<32x128xf32>
    %c18 = arith.constant 18 : index
    %c0_90 = arith.constant 0 : index
    %c0_91 = arith.constant 0 : index
    %243 = vector.load %arg4[%c18, %c0_90, %c0_91] : memref<32x32x128xbf16, #tpu.memory_space<vmem>>, vector<1x32x128xbf16>
    %244 = vector.shape_cast %243 : vector<1x32x128xbf16> to vector<32x128xbf16>
    %245 = arith.extf %244 : vector<32x128xbf16> to vector<32x128xf32>
    %246 = vector.extract_strided_slice %115 {offsets = [18, 0], sizes = [1, 128], strides = [1, 1]} : vector<32x128xf32> to vector<1x128xf32>
    %247 = vector.broadcast %246 : vector<1x128xf32> to vector<32x128xf32>
    %248 = arith.mulf %247, %245 : vector<32x128xf32>
    %249 = arith.addf %242, %248 : vector<32x128xf32>
    %c19 = arith.constant 19 : index
    %c0_92 = arith.constant 0 : index
    %c0_93 = arith.constant 0 : index
    %250 = vector.load %arg4[%c19, %c0_92, %c0_93] : memref<32x32x128xbf16, #tpu.memory_space<vmem>>, vector<1x32x128xbf16>
    %251 = vector.shape_cast %250 : vector<1x32x128xbf16> to vector<32x128xbf16>
    %252 = arith.extf %251 : vector<32x128xbf16> to vector<32x128xf32>
    %253 = vector.extract_strided_slice %115 {offsets = [19, 0], sizes = [1, 128], strides = [1, 1]} : vector<32x128xf32> to vector<1x128xf32>
    %254 = vector.broadcast %253 : vector<1x128xf32> to vector<32x128xf32>
    %255 = arith.mulf %254, %252 : vector<32x128xf32>
    %256 = arith.addf %249, %255 : vector<32x128xf32>
    %c20 = arith.constant 20 : index
    %c0_94 = arith.constant 0 : index
    %c0_95 = arith.constant 0 : index
    %257 = vector.load %arg4[%c20, %c0_94, %c0_95] : memref<32x32x128xbf16, #tpu.memory_space<vmem>>, vector<1x32x128xbf16>
    %258 = vector.shape_cast %257 : vector<1x32x128xbf16> to vector<32x128xbf16>
    %259 = arith.extf %258 : vector<32x128xbf16> to vector<32x128xf32>
    %260 = vector.extract_strided_slice %115 {offsets = [20, 0], sizes = [1, 128], strides = [1, 1]} : vector<32x128xf32> to vector<1x128xf32>
    %261 = vector.broadcast %260 : vector<1x128xf32> to vector<32x128xf32>
    %262 = arith.mulf %261, %259 : vector<32x128xf32>
    %263 = arith.addf %256, %262 : vector<32x128xf32>
    %c21 = arith.constant 21 : index
    %c0_96 = arith.constant 0 : index
    %c0_97 = arith.constant 0 : index
    %264 = vector.load %arg4[%c21, %c0_96, %c0_97] : memref<32x32x128xbf16, #tpu.memory_space<vmem>>, vector<1x32x128xbf16>
    %265 = vector.shape_cast %264 : vector<1x32x128xbf16> to vector<32x128xbf16>
    %266 = arith.extf %265 : vector<32x128xbf16> to vector<32x128xf32>
    %267 = vector.extract_strided_slice %115 {offsets = [21, 0], sizes = [1, 128], strides = [1, 1]} : vector<32x128xf32> to vector<1x128xf32>
    %268 = vector.broadcast %267 : vector<1x128xf32> to vector<32x128xf32>
    %269 = arith.mulf %268, %266 : vector<32x128xf32>
    %270 = arith.addf %263, %269 : vector<32x128xf32>
    %c22 = arith.constant 22 : index
    %c0_98 = arith.constant 0 : index
    %c0_99 = arith.constant 0 : index
    %271 = vector.load %arg4[%c22, %c0_98, %c0_99] : memref<32x32x128xbf16, #tpu.memory_space<vmem>>, vector<1x32x128xbf16>
    %272 = vector.shape_cast %271 : vector<1x32x128xbf16> to vector<32x128xbf16>
    %273 = arith.extf %272 : vector<32x128xbf16> to vector<32x128xf32>
    %274 = vector.extract_strided_slice %115 {offsets = [22, 0], sizes = [1, 128], strides = [1, 1]} : vector<32x128xf32> to vector<1x128xf32>
    %275 = vector.broadcast %274 : vector<1x128xf32> to vector<32x128xf32>
    %276 = arith.mulf %275, %273 : vector<32x128xf32>
    %277 = arith.addf %270, %276 : vector<32x128xf32>
    %c23 = arith.constant 23 : index
    %c0_100 = arith.constant 0 : index
    %c0_101 = arith.constant 0 : index
    %278 = vector.load %arg4[%c23, %c0_100, %c0_101] : memref<32x32x128xbf16, #tpu.memory_space<vmem>>, vector<1x32x128xbf16>
    %279 = vector.shape_cast %278 : vector<1x32x128xbf16> to vector<32x128xbf16>
    %280 = arith.extf %279 : vector<32x128xbf16> to vector<32x128xf32>
    %281 = vector.extract_strided_slice %115 {offsets = [23, 0], sizes = [1, 128], strides = [1, 1]} : vector<32x128xf32> to vector<1x128xf32>
    %282 = vector.broadcast %281 : vector<1x128xf32> to vector<32x128xf32>
    %283 = arith.mulf %282, %280 : vector<32x128xf32>
    %284 = arith.addf %277, %283 : vector<32x128xf32>
    %c24 = arith.constant 24 : index
    %c0_102 = arith.constant 0 : index
    %c0_103 = arith.constant 0 : index
    %285 = vector.load %arg4[%c24, %c0_102, %c0_103] : memref<32x32x128xbf16, #tpu.memory_space<vmem>>, vector<1x32x128xbf16>
    %286 = vector.shape_cast %285 : vector<1x32x128xbf16> to vector<32x128xbf16>
    %287 = arith.extf %286 : vector<32x128xbf16> to vector<32x128xf32>
    %288 = vector.extract_strided_slice %115 {offsets = [24, 0], sizes = [1, 128], strides = [1, 1]} : vector<32x128xf32> to vector<1x128xf32>
    %289 = vector.broadcast %288 : vector<1x128xf32> to vector<32x128xf32>
    %290 = arith.mulf %289, %287 : vector<32x128xf32>
    %291 = arith.addf %284, %290 : vector<32x128xf32>
    %c25 = arith.constant 25 : index
    %c0_104 = arith.constant 0 : index
    %c0_105 = arith.constant 0 : index
    %292 = vector.load %arg4[%c25, %c0_104, %c0_105] : memref<32x32x128xbf16, #tpu.memory_space<vmem>>, vector<1x32x128xbf16>
    %293 = vector.shape_cast %292 : vector<1x32x128xbf16> to vector<32x128xbf16>
    %294 = arith.extf %293 : vector<32x128xbf16> to vector<32x128xf32>
    %295 = vector.extract_strided_slice %115 {offsets = [25, 0], sizes = [1, 128], strides = [1, 1]} : vector<32x128xf32> to vector<1x128xf32>
    %296 = vector.broadcast %295 : vector<1x128xf32> to vector<32x128xf32>
    %297 = arith.mulf %296, %294 : vector<32x128xf32>
    %298 = arith.addf %291, %297 : vector<32x128xf32>
    %c26 = arith.constant 26 : index
    %c0_106 = arith.constant 0 : index
    %c0_107 = arith.constant 0 : index
    %299 = vector.load %arg4[%c26, %c0_106, %c0_107] : memref<32x32x128xbf16, #tpu.memory_space<vmem>>, vector<1x32x128xbf16>
    %300 = vector.shape_cast %299 : vector<1x32x128xbf16> to vector<32x128xbf16>
    %301 = arith.extf %300 : vector<32x128xbf16> to vector<32x128xf32>
    %302 = vector.extract_strided_slice %115 {offsets = [26, 0], sizes = [1, 128], strides = [1, 1]} : vector<32x128xf32> to vector<1x128xf32>
    %303 = vector.broadcast %302 : vector<1x128xf32> to vector<32x128xf32>
    %304 = arith.mulf %303, %301 : vector<32x128xf32>
    %305 = arith.addf %298, %304 : vector<32x128xf32>
    %c27 = arith.constant 27 : index
    %c0_108 = arith.constant 0 : index
    %c0_109 = arith.constant 0 : index
    %306 = vector.load %arg4[%c27, %c0_108, %c0_109] : memref<32x32x128xbf16, #tpu.memory_space<vmem>>, vector<1x32x128xbf16>
    %307 = vector.shape_cast %306 : vector<1x32x128xbf16> to vector<32x128xbf16>
    %308 = arith.extf %307 : vector<32x128xbf16> to vector<32x128xf32>
    %309 = vector.extract_strided_slice %115 {offsets = [27, 0], sizes = [1, 128], strides = [1, 1]} : vector<32x128xf32> to vector<1x128xf32>
    %310 = vector.broadcast %309 : vector<1x128xf32> to vector<32x128xf32>
    %311 = arith.mulf %310, %308 : vector<32x128xf32>
    %312 = arith.addf %305, %311 : vector<32x128xf32>
    %c28 = arith.constant 28 : index
    %c0_110 = arith.constant 0 : index
    %c0_111 = arith.constant 0 : index
    %313 = vector.load %arg4[%c28, %c0_110, %c0_111] : memref<32x32x128xbf16, #tpu.memory_space<vmem>>, vector<1x32x128xbf16>
    %314 = vector.shape_cast %313 : vector<1x32x128xbf16> to vector<32x128xbf16>
    %315 = arith.extf %314 : vector<32x128xbf16> to vector<32x128xf32>
    %316 = vector.extract_strided_slice %115 {offsets = [28, 0], sizes = [1, 128], strides = [1, 1]} : vector<32x128xf32> to vector<1x128xf32>
    %317 = vector.broadcast %316 : vector<1x128xf32> to vector<32x128xf32>
    %318 = arith.mulf %317, %315 : vector<32x128xf32>
    %319 = arith.addf %312, %318 : vector<32x128xf32>
    %c29 = arith.constant 29 : index
    %c0_112 = arith.constant 0 : index
    %c0_113 = arith.constant 0 : index
    %320 = vector.load %arg4[%c29, %c0_112, %c0_113] : memref<32x32x128xbf16, #tpu.memory_space<vmem>>, vector<1x32x128xbf16>
    %321 = vector.shape_cast %320 : vector<1x32x128xbf16> to vector<32x128xbf16>
    %322 = arith.extf %321 : vector<32x128xbf16> to vector<32x128xf32>
    %323 = vector.extract_strided_slice %115 {offsets = [29, 0], sizes = [1, 128], strides = [1, 1]} : vector<32x128xf32> to vector<1x128xf32>
    %324 = vector.broadcast %323 : vector<1x128xf32> to vector<32x128xf32>
    %325 = arith.mulf %324, %322 : vector<32x128xf32>
    %326 = arith.addf %319, %325 : vector<32x128xf32>
    %c30 = arith.constant 30 : index
    %c0_114 = arith.constant 0 : index
    %c0_115 = arith.constant 0 : index
    %327 = vector.load %arg4[%c30, %c0_114, %c0_115] : memref<32x32x128xbf16, #tpu.memory_space<vmem>>, vector<1x32x128xbf16>
    %328 = vector.shape_cast %327 : vector<1x32x128xbf16> to vector<32x128xbf16>
    %329 = arith.extf %328 : vector<32x128xbf16> to vector<32x128xf32>
    %330 = vector.extract_strided_slice %115 {offsets = [30, 0], sizes = [1, 128], strides = [1, 1]} : vector<32x128xf32> to vector<1x128xf32>
    %331 = vector.broadcast %330 : vector<1x128xf32> to vector<32x128xf32>
    %332 = arith.mulf %331, %329 : vector<32x128xf32>
    %333 = arith.addf %326, %332 : vector<32x128xf32>
    %c31 = arith.constant 31 : index
    %c0_116 = arith.constant 0 : index
    %c0_117 = arith.constant 0 : index
    %334 = vector.load %arg4[%c31, %c0_116, %c0_117] : memref<32x32x128xbf16, #tpu.memory_space<vmem>>, vector<1x32x128xbf16>
    %335 = vector.shape_cast %334 : vector<1x32x128xbf16> to vector<32x128xbf16>
    %336 = arith.extf %335 : vector<32x128xbf16> to vector<32x128xf32>
    %337 = vector.extract_strided_slice %115 {offsets = [31, 0], sizes = [1, 128], strides = [1, 1]} : vector<32x128xf32> to vector<1x128xf32>
    %338 = vector.broadcast %337 : vector<1x128xf32> to vector<32x128xf32>
    %339 = arith.mulf %338, %336 : vector<32x128xf32>
    %340 = arith.addf %333, %339 : vector<32x128xf32>
    %cst_118 = arith.constant 0.000000e+00 : f32
    %341 = vector.broadcast %cst_118 : f32 to vector<32x128xf32>
    %342 = arith.maximumf %340, %341 : vector<32x128xf32>
    %c0_119 = arith.constant 0 : index
    %c0_120 = arith.constant 0 : index
    %343 = vector.load %arg7[%c0_119, %c0_120] : memref<8x128xf32, #tpu.memory_space<vmem>>, vector<8x128xf32>
    %c0_121 = arith.constant 0 : index
    %c0_122 = arith.constant 0 : index
    %c0_123 = arith.constant 0 : index
    %344 = vector.load %arg6[%c0_121, %c0_122, %c0_123] : memref<32x8x128xbf16, #tpu.memory_space<vmem>>, vector<1x8x128xbf16>
    %345 = vector.shape_cast %344 : vector<1x8x128xbf16> to vector<8x128xbf16>
    %346 = arith.extf %345 : vector<8x128xbf16> to vector<8x128xf32>
    %347 = vector.extract_strided_slice %342 {offsets = [0, 0], sizes = [1, 128], strides = [1, 1]} : vector<32x128xf32> to vector<1x128xf32>
    %348 = vector.broadcast %347 : vector<1x128xf32> to vector<8x128xf32>
    %349 = arith.mulf %348, %346 : vector<8x128xf32>
    %350 = arith.addf %343, %349 : vector<8x128xf32>
    %c1_124 = arith.constant 1 : index
    %c0_125 = arith.constant 0 : index
    %c0_126 = arith.constant 0 : index
    %351 = vector.load %arg6[%c1_124, %c0_125, %c0_126] : memref<32x8x128xbf16, #tpu.memory_space<vmem>>, vector<1x8x128xbf16>
    %352 = vector.shape_cast %351 : vector<1x8x128xbf16> to vector<8x128xbf16>
    %353 = arith.extf %352 : vector<8x128xbf16> to vector<8x128xf32>
    %354 = vector.extract_strided_slice %342 {offsets = [1, 0], sizes = [1, 128], strides = [1, 1]} : vector<32x128xf32> to vector<1x128xf32>
    %355 = vector.broadcast %354 : vector<1x128xf32> to vector<8x128xf32>
    %356 = arith.mulf %355, %353 : vector<8x128xf32>
    %357 = arith.addf %350, %356 : vector<8x128xf32>
    %c2_127 = arith.constant 2 : index
    %c0_128 = arith.constant 0 : index
    %c0_129 = arith.constant 0 : index
    %358 = vector.load %arg6[%c2_127, %c0_128, %c0_129] : memref<32x8x128xbf16, #tpu.memory_space<vmem>>, vector<1x8x128xbf16>
    %359 = vector.shape_cast %358 : vector<1x8x128xbf16> to vector<8x128xbf16>
    %360 = arith.extf %359 : vector<8x128xbf16> to vector<8x128xf32>
    %361 = vector.extract_strided_slice %342 {offsets = [2, 0], sizes = [1, 128], strides = [1, 1]} : vector<32x128xf32> to vector<1x128xf32>
    %362 = vector.broadcast %361 : vector<1x128xf32> to vector<8x128xf32>
    %363 = arith.mulf %362, %360 : vector<8x128xf32>
    %364 = arith.addf %357, %363 : vector<8x128xf32>
    %c3_130 = arith.constant 3 : index
    %c0_131 = arith.constant 0 : index
    %c0_132 = arith.constant 0 : index
    %365 = vector.load %arg6[%c3_130, %c0_131, %c0_132] : memref<32x8x128xbf16, #tpu.memory_space<vmem>>, vector<1x8x128xbf16>
    %366 = vector.shape_cast %365 : vector<1x8x128xbf16> to vector<8x128xbf16>
    %367 = arith.extf %366 : vector<8x128xbf16> to vector<8x128xf32>
    %368 = vector.extract_strided_slice %342 {offsets = [3, 0], sizes = [1, 128], strides = [1, 1]} : vector<32x128xf32> to vector<1x128xf32>
    %369 = vector.broadcast %368 : vector<1x128xf32> to vector<8x128xf32>
    %370 = arith.mulf %369, %367 : vector<8x128xf32>
    %371 = arith.addf %364, %370 : vector<8x128xf32>
    %c4_133 = arith.constant 4 : index
    %c0_134 = arith.constant 0 : index
    %c0_135 = arith.constant 0 : index
    %372 = vector.load %arg6[%c4_133, %c0_134, %c0_135] : memref<32x8x128xbf16, #tpu.memory_space<vmem>>, vector<1x8x128xbf16>
    %373 = vector.shape_cast %372 : vector<1x8x128xbf16> to vector<8x128xbf16>
    %374 = arith.extf %373 : vector<8x128xbf16> to vector<8x128xf32>
    %375 = vector.extract_strided_slice %342 {offsets = [4, 0], sizes = [1, 128], strides = [1, 1]} : vector<32x128xf32> to vector<1x128xf32>
    %376 = vector.broadcast %375 : vector<1x128xf32> to vector<8x128xf32>
    %377 = arith.mulf %376, %374 : vector<8x128xf32>
    %378 = arith.addf %371, %377 : vector<8x128xf32>
    %c5_136 = arith.constant 5 : index
    %c0_137 = arith.constant 0 : index
    %c0_138 = arith.constant 0 : index
    %379 = vector.load %arg6[%c5_136, %c0_137, %c0_138] : memref<32x8x128xbf16, #tpu.memory_space<vmem>>, vector<1x8x128xbf16>
    %380 = vector.shape_cast %379 : vector<1x8x128xbf16> to vector<8x128xbf16>
    %381 = arith.extf %380 : vector<8x128xbf16> to vector<8x128xf32>
    %382 = vector.extract_strided_slice %342 {offsets = [5, 0], sizes = [1, 128], strides = [1, 1]} : vector<32x128xf32> to vector<1x128xf32>
    %383 = vector.broadcast %382 : vector<1x128xf32> to vector<8x128xf32>
    %384 = arith.mulf %383, %381 : vector<8x128xf32>
    %385 = arith.addf %378, %384 : vector<8x128xf32>
    %c6_139 = arith.constant 6 : index
    %c0_140 = arith.constant 0 : index
    %c0_141 = arith.constant 0 : index
    %386 = vector.load %arg6[%c6_139, %c0_140, %c0_141] : memref<32x8x128xbf16, #tpu.memory_space<vmem>>, vector<1x8x128xbf16>
    %387 = vector.shape_cast %386 : vector<1x8x128xbf16> to vector<8x128xbf16>
    %388 = arith.extf %387 : vector<8x128xbf16> to vector<8x128xf32>
    %389 = vector.extract_strided_slice %342 {offsets = [6, 0], sizes = [1, 128], strides = [1, 1]} : vector<32x128xf32> to vector<1x128xf32>
    %390 = vector.broadcast %389 : vector<1x128xf32> to vector<8x128xf32>
    %391 = arith.mulf %390, %388 : vector<8x128xf32>
    %392 = arith.addf %385, %391 : vector<8x128xf32>
    %c7_142 = arith.constant 7 : index
    %c0_143 = arith.constant 0 : index
    %c0_144 = arith.constant 0 : index
    %393 = vector.load %arg6[%c7_142, %c0_143, %c0_144] : memref<32x8x128xbf16, #tpu.memory_space<vmem>>, vector<1x8x128xbf16>
    %394 = vector.shape_cast %393 : vector<1x8x128xbf16> to vector<8x128xbf16>
    %395 = arith.extf %394 : vector<8x128xbf16> to vector<8x128xf32>
    %396 = vector.extract_strided_slice %342 {offsets = [7, 0], sizes = [1, 128], strides = [1, 1]} : vector<32x128xf32> to vector<1x128xf32>
    %397 = vector.broadcast %396 : vector<1x128xf32> to vector<8x128xf32>
    %398 = arith.mulf %397, %395 : vector<8x128xf32>
    %399 = arith.addf %392, %398 : vector<8x128xf32>
    %c8_145 = arith.constant 8 : index
    %c0_146 = arith.constant 0 : index
    %c0_147 = arith.constant 0 : index
    %400 = vector.load %arg6[%c8_145, %c0_146, %c0_147] : memref<32x8x128xbf16, #tpu.memory_space<vmem>>, vector<1x8x128xbf16>
    %401 = vector.shape_cast %400 : vector<1x8x128xbf16> to vector<8x128xbf16>
    %402 = arith.extf %401 : vector<8x128xbf16> to vector<8x128xf32>
    %403 = vector.extract_strided_slice %342 {offsets = [8, 0], sizes = [1, 128], strides = [1, 1]} : vector<32x128xf32> to vector<1x128xf32>
    %404 = vector.broadcast %403 : vector<1x128xf32> to vector<8x128xf32>
    %405 = arith.mulf %404, %402 : vector<8x128xf32>
    %406 = arith.addf %399, %405 : vector<8x128xf32>
    %c9_148 = arith.constant 9 : index
    %c0_149 = arith.constant 0 : index
    %c0_150 = arith.constant 0 : index
    %407 = vector.load %arg6[%c9_148, %c0_149, %c0_150] : memref<32x8x128xbf16, #tpu.memory_space<vmem>>, vector<1x8x128xbf16>
    %408 = vector.shape_cast %407 : vector<1x8x128xbf16> to vector<8x128xbf16>
    %409 = arith.extf %408 : vector<8x128xbf16> to vector<8x128xf32>
    %410 = vector.extract_strided_slice %342 {offsets = [9, 0], sizes = [1, 128], strides = [1, 1]} : vector<32x128xf32> to vector<1x128xf32>
    %411 = vector.broadcast %410 : vector<1x128xf32> to vector<8x128xf32>
    %412 = arith.mulf %411, %409 : vector<8x128xf32>
    %413 = arith.addf %406, %412 : vector<8x128xf32>
    %c10_151 = arith.constant 10 : index
    %c0_152 = arith.constant 0 : index
    %c0_153 = arith.constant 0 : index
    %414 = vector.load %arg6[%c10_151, %c0_152, %c0_153] : memref<32x8x128xbf16, #tpu.memory_space<vmem>>, vector<1x8x128xbf16>
    %415 = vector.shape_cast %414 : vector<1x8x128xbf16> to vector<8x128xbf16>
    %416 = arith.extf %415 : vector<8x128xbf16> to vector<8x128xf32>
    %417 = vector.extract_strided_slice %342 {offsets = [10, 0], sizes = [1, 128], strides = [1, 1]} : vector<32x128xf32> to vector<1x128xf32>
    %418 = vector.broadcast %417 : vector<1x128xf32> to vector<8x128xf32>
    %419 = arith.mulf %418, %416 : vector<8x128xf32>
    %420 = arith.addf %413, %419 : vector<8x128xf32>
    %c11_154 = arith.constant 11 : index
    %c0_155 = arith.constant 0 : index
    %c0_156 = arith.constant 0 : index
    %421 = vector.load %arg6[%c11_154, %c0_155, %c0_156] : memref<32x8x128xbf16, #tpu.memory_space<vmem>>, vector<1x8x128xbf16>
    %422 = vector.shape_cast %421 : vector<1x8x128xbf16> to vector<8x128xbf16>
    %423 = arith.extf %422 : vector<8x128xbf16> to vector<8x128xf32>
    %424 = vector.extract_strided_slice %342 {offsets = [11, 0], sizes = [1, 128], strides = [1, 1]} : vector<32x128xf32> to vector<1x128xf32>
    %425 = vector.broadcast %424 : vector<1x128xf32> to vector<8x128xf32>
    %426 = arith.mulf %425, %423 : vector<8x128xf32>
    %427 = arith.addf %420, %426 : vector<8x128xf32>
    %c12_157 = arith.constant 12 : index
    %c0_158 = arith.constant 0 : index
    %c0_159 = arith.constant 0 : index
    %428 = vector.load %arg6[%c12_157, %c0_158, %c0_159] : memref<32x8x128xbf16, #tpu.memory_space<vmem>>, vector<1x8x128xbf16>
    %429 = vector.shape_cast %428 : vector<1x8x128xbf16> to vector<8x128xbf16>
    %430 = arith.extf %429 : vector<8x128xbf16> to vector<8x128xf32>
    %431 = vector.extract_strided_slice %342 {offsets = [12, 0], sizes = [1, 128], strides = [1, 1]} : vector<32x128xf32> to vector<1x128xf32>
    %432 = vector.broadcast %431 : vector<1x128xf32> to vector<8x128xf32>
    %433 = arith.mulf %432, %430 : vector<8x128xf32>
    %434 = arith.addf %427, %433 : vector<8x128xf32>
    %c13_160 = arith.constant 13 : index
    %c0_161 = arith.constant 0 : index
    %c0_162 = arith.constant 0 : index
    %435 = vector.load %arg6[%c13_160, %c0_161, %c0_162] : memref<32x8x128xbf16, #tpu.memory_space<vmem>>, vector<1x8x128xbf16>
    %436 = vector.shape_cast %435 : vector<1x8x128xbf16> to vector<8x128xbf16>
    %437 = arith.extf %436 : vector<8x128xbf16> to vector<8x128xf32>
    %438 = vector.extract_strided_slice %342 {offsets = [13, 0], sizes = [1, 128], strides = [1, 1]} : vector<32x128xf32> to vector<1x128xf32>
    %439 = vector.broadcast %438 : vector<1x128xf32> to vector<8x128xf32>
    %440 = arith.mulf %439, %437 : vector<8x128xf32>
    %441 = arith.addf %434, %440 : vector<8x128xf32>
    %c14_163 = arith.constant 14 : index
    %c0_164 = arith.constant 0 : index
    %c0_165 = arith.constant 0 : index
    %442 = vector.load %arg6[%c14_163, %c0_164, %c0_165] : memref<32x8x128xbf16, #tpu.memory_space<vmem>>, vector<1x8x128xbf16>
    %443 = vector.shape_cast %442 : vector<1x8x128xbf16> to vector<8x128xbf16>
    %444 = arith.extf %443 : vector<8x128xbf16> to vector<8x128xf32>
    %445 = vector.extract_strided_slice %342 {offsets = [14, 0], sizes = [1, 128], strides = [1, 1]} : vector<32x128xf32> to vector<1x128xf32>
    %446 = vector.broadcast %445 : vector<1x128xf32> to vector<8x128xf32>
    %447 = arith.mulf %446, %444 : vector<8x128xf32>
    %448 = arith.addf %441, %447 : vector<8x128xf32>
    %c15_166 = arith.constant 15 : index
    %c0_167 = arith.constant 0 : index
    %c0_168 = arith.constant 0 : index
    %449 = vector.load %arg6[%c15_166, %c0_167, %c0_168] : memref<32x8x128xbf16, #tpu.memory_space<vmem>>, vector<1x8x128xbf16>
    %450 = vector.shape_cast %449 : vector<1x8x128xbf16> to vector<8x128xbf16>
    %451 = arith.extf %450 : vector<8x128xbf16> to vector<8x128xf32>
    %452 = vector.extract_strided_slice %342 {offsets = [15, 0], sizes = [1, 128], strides = [1, 1]} : vector<32x128xf32> to vector<1x128xf32>
    %453 = vector.broadcast %452 : vector<1x128xf32> to vector<8x128xf32>
    %454 = arith.mulf %453, %451 : vector<8x128xf32>
    %455 = arith.addf %448, %454 : vector<8x128xf32>
    %c16_169 = arith.constant 16 : index
    %c0_170 = arith.constant 0 : index
    %c0_171 = arith.constant 0 : index
    %456 = vector.load %arg6[%c16_169, %c0_170, %c0_171] : memref<32x8x128xbf16, #tpu.memory_space<vmem>>, vector<1x8x128xbf16>
    %457 = vector.shape_cast %456 : vector<1x8x128xbf16> to vector<8x128xbf16>
    %458 = arith.extf %457 : vector<8x128xbf16> to vector<8x128xf32>
    %459 = vector.extract_strided_slice %342 {offsets = [16, 0], sizes = [1, 128], strides = [1, 1]} : vector<32x128xf32> to vector<1x128xf32>
    %460 = vector.broadcast %459 : vector<1x128xf32> to vector<8x128xf32>
    %461 = arith.mulf %460, %458 : vector<8x128xf32>
    %462 = arith.addf %455, %461 : vector<8x128xf32>
    %c17_172 = arith.constant 17 : index
    %c0_173 = arith.constant 0 : index
    %c0_174 = arith.constant 0 : index
    %463 = vector.load %arg6[%c17_172, %c0_173, %c0_174] : memref<32x8x128xbf16, #tpu.memory_space<vmem>>, vector<1x8x128xbf16>
    %464 = vector.shape_cast %463 : vector<1x8x128xbf16> to vector<8x128xbf16>
    %465 = arith.extf %464 : vector<8x128xbf16> to vector<8x128xf32>
    %466 = vector.extract_strided_slice %342 {offsets = [17, 0], sizes = [1, 128], strides = [1, 1]} : vector<32x128xf32> to vector<1x128xf32>
    %467 = vector.broadcast %466 : vector<1x128xf32> to vector<8x128xf32>
    %468 = arith.mulf %467, %465 : vector<8x128xf32>
    %469 = arith.addf %462, %468 : vector<8x128xf32>
    %c18_175 = arith.constant 18 : index
    %c0_176 = arith.constant 0 : index
    %c0_177 = arith.constant 0 : index
    %470 = vector.load %arg6[%c18_175, %c0_176, %c0_177] : memref<32x8x128xbf16, #tpu.memory_space<vmem>>, vector<1x8x128xbf16>
    %471 = vector.shape_cast %470 : vector<1x8x128xbf16> to vector<8x128xbf16>
    %472 = arith.extf %471 : vector<8x128xbf16> to vector<8x128xf32>
    %473 = vector.extract_strided_slice %342 {offsets = [18, 0], sizes = [1, 128], strides = [1, 1]} : vector<32x128xf32> to vector<1x128xf32>
    %474 = vector.broadcast %473 : vector<1x128xf32> to vector<8x128xf32>
    %475 = arith.mulf %474, %472 : vector<8x128xf32>
    %476 = arith.addf %469, %475 : vector<8x128xf32>
    %c19_178 = arith.constant 19 : index
    %c0_179 = arith.constant 0 : index
    %c0_180 = arith.constant 0 : index
    %477 = vector.load %arg6[%c19_178, %c0_179, %c0_180] : memref<32x8x128xbf16, #tpu.memory_space<vmem>>, vector<1x8x128xbf16>
    %478 = vector.shape_cast %477 : vector<1x8x128xbf16> to vector<8x128xbf16>
    %479 = arith.extf %478 : vector<8x128xbf16> to vector<8x128xf32>
    %480 = vector.extract_strided_slice %342 {offsets = [19, 0], sizes = [1, 128], strides = [1, 1]} : vector<32x128xf32> to vector<1x128xf32>
    %481 = vector.broadcast %480 : vector<1x128xf32> to vector<8x128xf32>
    %482 = arith.mulf %481, %479 : vector<8x128xf32>
    %483 = arith.addf %476, %482 : vector<8x128xf32>
    %c20_181 = arith.constant 20 : index
    %c0_182 = arith.constant 0 : index
    %c0_183 = arith.constant 0 : index
    %484 = vector.load %arg6[%c20_181, %c0_182, %c0_183] : memref<32x8x128xbf16, #tpu.memory_space<vmem>>, vector<1x8x128xbf16>
    %485 = vector.shape_cast %484 : vector<1x8x128xbf16> to vector<8x128xbf16>
    %486 = arith.extf %485 : vector<8x128xbf16> to vector<8x128xf32>
    %487 = vector.extract_strided_slice %342 {offsets = [20, 0], sizes = [1, 128], strides = [1, 1]} : vector<32x128xf32> to vector<1x128xf32>
    %488 = vector.broadcast %487 : vector<1x128xf32> to vector<8x128xf32>
    %489 = arith.mulf %488, %486 : vector<8x128xf32>
    %490 = arith.addf %483, %489 : vector<8x128xf32>
    %c21_184 = arith.constant 21 : index
    %c0_185 = arith.constant 0 : index
    %c0_186 = arith.constant 0 : index
    %491 = vector.load %arg6[%c21_184, %c0_185, %c0_186] : memref<32x8x128xbf16, #tpu.memory_space<vmem>>, vector<1x8x128xbf16>
    %492 = vector.shape_cast %491 : vector<1x8x128xbf16> to vector<8x128xbf16>
    %493 = arith.extf %492 : vector<8x128xbf16> to vector<8x128xf32>
    %494 = vector.extract_strided_slice %342 {offsets = [21, 0], sizes = [1, 128], strides = [1, 1]} : vector<32x128xf32> to vector<1x128xf32>
    %495 = vector.broadcast %494 : vector<1x128xf32> to vector<8x128xf32>
    %496 = arith.mulf %495, %493 : vector<8x128xf32>
    %497 = arith.addf %490, %496 : vector<8x128xf32>
    %c22_187 = arith.constant 22 : index
    %c0_188 = arith.constant 0 : index
    %c0_189 = arith.constant 0 : index
    %498 = vector.load %arg6[%c22_187, %c0_188, %c0_189] : memref<32x8x128xbf16, #tpu.memory_space<vmem>>, vector<1x8x128xbf16>
    %499 = vector.shape_cast %498 : vector<1x8x128xbf16> to vector<8x128xbf16>
    %500 = arith.extf %499 : vector<8x128xbf16> to vector<8x128xf32>
    %501 = vector.extract_strided_slice %342 {offsets = [22, 0], sizes = [1, 128], strides = [1, 1]} : vector<32x128xf32> to vector<1x128xf32>
    %502 = vector.broadcast %501 : vector<1x128xf32> to vector<8x128xf32>
    %503 = arith.mulf %502, %500 : vector<8x128xf32>
    %504 = arith.addf %497, %503 : vector<8x128xf32>
    %c23_190 = arith.constant 23 : index
    %c0_191 = arith.constant 0 : index
    %c0_192 = arith.constant 0 : index
    %505 = vector.load %arg6[%c23_190, %c0_191, %c0_192] : memref<32x8x128xbf16, #tpu.memory_space<vmem>>, vector<1x8x128xbf16>
    %506 = vector.shape_cast %505 : vector<1x8x128xbf16> to vector<8x128xbf16>
    %507 = arith.extf %506 : vector<8x128xbf16> to vector<8x128xf32>
    %508 = vector.extract_strided_slice %342 {offsets = [23, 0], sizes = [1, 128], strides = [1, 1]} : vector<32x128xf32> to vector<1x128xf32>
    %509 = vector.broadcast %508 : vector<1x128xf32> to vector<8x128xf32>
    %510 = arith.mulf %509, %507 : vector<8x128xf32>
    %511 = arith.addf %504, %510 : vector<8x128xf32>
    %c24_193 = arith.constant 24 : index
    %c0_194 = arith.constant 0 : index
    %c0_195 = arith.constant 0 : index
    %512 = vector.load %arg6[%c24_193, %c0_194, %c0_195] : memref<32x8x128xbf16, #tpu.memory_space<vmem>>, vector<1x8x128xbf16>
    %513 = vector.shape_cast %512 : vector<1x8x128xbf16> to vector<8x128xbf16>
    %514 = arith.extf %513 : vector<8x128xbf16> to vector<8x128xf32>
    %515 = vector.extract_strided_slice %342 {offsets = [24, 0], sizes = [1, 128], strides = [1, 1]} : vector<32x128xf32> to vector<1x128xf32>
    %516 = vector.broadcast %515 : vector<1x128xf32> to vector<8x128xf32>
    %517 = arith.mulf %516, %514 : vector<8x128xf32>
    %518 = arith.addf %511, %517 : vector<8x128xf32>
    %c25_196 = arith.constant 25 : index
    %c0_197 = arith.constant 0 : index
    %c0_198 = arith.constant 0 : index
    %519 = vector.load %arg6[%c25_196, %c0_197, %c0_198] : memref<32x8x128xbf16, #tpu.memory_space<vmem>>, vector<1x8x128xbf16>
    %520 = vector.shape_cast %519 : vector<1x8x128xbf16> to vector<8x128xbf16>
    %521 = arith.extf %520 : vector<8x128xbf16> to vector<8x128xf32>
    %522 = vector.extract_strided_slice %342 {offsets = [25, 0], sizes = [1, 128], strides = [1, 1]} : vector<32x128xf32> to vector<1x128xf32>
    %523 = vector.broadcast %522 : vector<1x128xf32> to vector<8x128xf32>
    %524 = arith.mulf %523, %521 : vector<8x128xf32>
    %525 = arith.addf %518, %524 : vector<8x128xf32>
    %c26_199 = arith.constant 26 : index
    %c0_200 = arith.constant 0 : index
    %c0_201 = arith.constant 0 : index
    %526 = vector.load %arg6[%c26_199, %c0_200, %c0_201] : memref<32x8x128xbf16, #tpu.memory_space<vmem>>, vector<1x8x128xbf16>
    %527 = vector.shape_cast %526 : vector<1x8x128xbf16> to vector<8x128xbf16>
    %528 = arith.extf %527 : vector<8x128xbf16> to vector<8x128xf32>
    %529 = vector.extract_strided_slice %342 {offsets = [26, 0], sizes = [1, 128], strides = [1, 1]} : vector<32x128xf32> to vector<1x128xf32>
    %530 = vector.broadcast %529 : vector<1x128xf32> to vector<8x128xf32>
    %531 = arith.mulf %530, %528 : vector<8x128xf32>
    %532 = arith.addf %525, %531 : vector<8x128xf32>
    %c27_202 = arith.constant 27 : index
    %c0_203 = arith.constant 0 : index
    %c0_204 = arith.constant 0 : index
    %533 = vector.load %arg6[%c27_202, %c0_203, %c0_204] : memref<32x8x128xbf16, #tpu.memory_space<vmem>>, vector<1x8x128xbf16>
    %534 = vector.shape_cast %533 : vector<1x8x128xbf16> to vector<8x128xbf16>
    %535 = arith.extf %534 : vector<8x128xbf16> to vector<8x128xf32>
    %536 = vector.extract_strided_slice %342 {offsets = [27, 0], sizes = [1, 128], strides = [1, 1]} : vector<32x128xf32> to vector<1x128xf32>
    %537 = vector.broadcast %536 : vector<1x128xf32> to vector<8x128xf32>
    %538 = arith.mulf %537, %535 : vector<8x128xf32>
    %539 = arith.addf %532, %538 : vector<8x128xf32>
    %c28_205 = arith.constant 28 : index
    %c0_206 = arith.constant 0 : index
    %c0_207 = arith.constant 0 : index
    %540 = vector.load %arg6[%c28_205, %c0_206, %c0_207] : memref<32x8x128xbf16, #tpu.memory_space<vmem>>, vector<1x8x128xbf16>
    %541 = vector.shape_cast %540 : vector<1x8x128xbf16> to vector<8x128xbf16>
    %542 = arith.extf %541 : vector<8x128xbf16> to vector<8x128xf32>
    %543 = vector.extract_strided_slice %342 {offsets = [28, 0], sizes = [1, 128], strides = [1, 1]} : vector<32x128xf32> to vector<1x128xf32>
    %544 = vector.broadcast %543 : vector<1x128xf32> to vector<8x128xf32>
    %545 = arith.mulf %544, %542 : vector<8x128xf32>
    %546 = arith.addf %539, %545 : vector<8x128xf32>
    %c29_208 = arith.constant 29 : index
    %c0_209 = arith.constant 0 : index
    %c0_210 = arith.constant 0 : index
    %547 = vector.load %arg6[%c29_208, %c0_209, %c0_210] : memref<32x8x128xbf16, #tpu.memory_space<vmem>>, vector<1x8x128xbf16>
    %548 = vector.shape_cast %547 : vector<1x8x128xbf16> to vector<8x128xbf16>
    %549 = arith.extf %548 : vector<8x128xbf16> to vector<8x128xf32>
    %550 = vector.extract_strided_slice %342 {offsets = [29, 0], sizes = [1, 128], strides = [1, 1]} : vector<32x128xf32> to vector<1x128xf32>
    %551 = vector.broadcast %550 : vector<1x128xf32> to vector<8x128xf32>
    %552 = arith.mulf %551, %549 : vector<8x128xf32>
    %553 = arith.addf %546, %552 : vector<8x128xf32>
    %c30_211 = arith.constant 30 : index
    %c0_212 = arith.constant 0 : index
    %c0_213 = arith.constant 0 : index
    %554 = vector.load %arg6[%c30_211, %c0_212, %c0_213] : memref<32x8x128xbf16, #tpu.memory_space<vmem>>, vector<1x8x128xbf16>
    %555 = vector.shape_cast %554 : vector<1x8x128xbf16> to vector<8x128xbf16>
    %556 = arith.extf %555 : vector<8x128xbf16> to vector<8x128xf32>
    %557 = vector.extract_strided_slice %342 {offsets = [30, 0], sizes = [1, 128], strides = [1, 1]} : vector<32x128xf32> to vector<1x128xf32>
    %558 = vector.broadcast %557 : vector<1x128xf32> to vector<8x128xf32>
    %559 = arith.mulf %558, %556 : vector<8x128xf32>
    %560 = arith.addf %553, %559 : vector<8x128xf32>
    %c31_214 = arith.constant 31 : index
    %c0_215 = arith.constant 0 : index
    %c0_216 = arith.constant 0 : index
    %561 = vector.load %arg6[%c31_214, %c0_215, %c0_216] : memref<32x8x128xbf16, #tpu.memory_space<vmem>>, vector<1x8x128xbf16>
    %562 = vector.shape_cast %561 : vector<1x8x128xbf16> to vector<8x128xbf16>
    %563 = arith.extf %562 : vector<8x128xbf16> to vector<8x128xf32>
    %564 = vector.extract_strided_slice %342 {offsets = [31, 0], sizes = [1, 128], strides = [1, 1]} : vector<32x128xf32> to vector<1x128xf32>
    %565 = vector.broadcast %564 : vector<1x128xf32> to vector<8x128xf32>
    %566 = arith.mulf %565, %563 : vector<8x128xf32>
    %567 = arith.addf %560, %566 : vector<8x128xf32>
    %c0_217 = arith.constant 0 : index
    %c0_218 = arith.constant 0 : index
    %568 = vector.load %arg8[%c0_217, %c0_218] : memref<8x128xf32, #tpu.memory_space<vmem>>, vector<8x128xf32>
    tpu.vector_store %arg8[%c0_217, %c0_218], %567 {strides = array<i32>} : memref<8x128xf32, #tpu.memory_space<vmem>>, vector<8x128xf32>,
    return
  }
  func.func @transform_0(%arg0: i32) -> (i32, i32) {
    %c0_i32 = arith.constant 0 : i32
    %c0_i32_0 = arith.constant 0 : i32
    return %c0_i32, %arg0 : i32, i32
  }
  func.func @transform_1(%arg0: i32) -> (i32, i32, i32) {
    %c0_i32 = arith.constant 0 : i32
    %c0_i32_0 = arith.constant 0 : i32
    %c0_i32_1 = arith.constant 0 : i32
    return %c0_i32, %c0_i32_0, %arg0 : i32, i32, i32
  }
  func.func @transform_2(%arg0: i32) -> (i32, i32) {
    %c0_i32 = arith.constant 0 : i32
    %c0_i32_0 = arith.constant 0 : i32
    return %c0_i32, %arg0 : i32, i32
  }
  func.func @transform_3(%arg0: i32) -> (i32, i32, i32) {
    %c0_i32 = arith.constant 0 : i32
    %c0_i32_0 = arith.constant 0 : i32
    %c0_i32_1 = arith.constant 0 : i32
    return %c0_i32, %c0_i32_0, %arg0 : i32, i32, i32
  }
  func.func @transform_4(%arg0: i32) -> (i32, i32) {
    %c0_i32 = arith.constant 0 : i32
    %c0_i32_0 = arith.constant 0 : i32
    return %c0_i32, %arg0 : i32, i32
  }
  func.func @transform_5(%arg0: i32) -> (i32, i32, i32) {
    %c0_i32 = arith.constant 0 : i32
    %c0_i32_0 = arith.constant 0 : i32
    %c0_i32_1 = arith.constant 0 : i32
    return %c0_i32, %c0_i32_0, %arg0 : i32, i32, i32
  }
  func.func @transform_6(%arg0: i32) -> (i32, i32) {
    %c0_i32 = arith.constant 0 : i32
    %c0_i32_0 = arith.constant 0 : i32
    return %c0_i32, %arg0 : i32, i32
  }
  func.func @transform_7(%arg0: i32) -> (i32, i32) {
    %c0_i32 = arith.constant 0 : i32
    %c0_i32_0 = arith.constant 0 : i32
    return %c0_i32, %arg0 : i32, i32
  }
}

</mosaic_0001>

<bundles_post_ra>
// kernel: tpu_custom_call.1
= control target key start
LH: loop header
LB: loop body
LE: loop exit
PB: predicated region body
PF: predicated region fallthrough
CT: control target
= control target key end

     0   :  { %12 = vsyncpa [#allocation3], 0  ;;  %s2702_s0 = inlined_call_operand.hbm [shape: f32[16,128], index: 0, kind: input, shape index: {}]   ;;  %s2703_s1 = inlined_call_operand.hbm [shape: bf16[16,32,128], index: 1, kind: input, shape index: {}]   ;;  %s2704_s2 = inlined_call_operand.hbm [shape: f32[32,128], index: 2, kind: input, shape index: {}]   ;;  %s2705_s3 = inlined_call_operand.hbm [shape: bf16[32,32,128], index: 3, kind: input, shape index: {}]   ;;  %s2706_s4 = inlined_call_operand.hbm [shape: f32[32,128], index: 4, kind: input, shape index: {}]   ;;  %s2707_s5 = inlined_call_operand.hbm [shape: bf16[32,8,128], index: 5, kind: input, shape index: {}]   ;;  %s2708_s6 = inlined_call_operand.vmem [shape: f32[8,128], index: 6, kind: input, shape index: {}]   ;;  %s2709_s7 = inlined_call_operand.hbm [shape: f32[8,128], index: 7, kind: output, shape index: {}]  }
   0x1   :  { %13 = vsyncpa [#allocation6], 0 }
   0x2   :  { %14 = vsyncpa [#allocation9], 0 }
   0x3   :  { %15 = vsyncpa [#allocation12], 0 }
   0x4   :  { %16 = vsyncpa [#allocation4], 0  ;;  %s2047_s24 = smov [#allocation5]   ;;  %s1883_s28 = scalar_lea.hbm %s2703_s1, 4096 }
   0x5   :  { %s34_s25 = sshll.u32 %s2047_s24, 4  ;;  %p1884_p0 = scmp.ne.s32.totalorder %s2703_s1, %s1883_s28  ;;  %s35_s25 = int_to_ptr.vmem [resolvable:$true] %s34_s25 }
   0x6   :  { %p1887_p1 = scmp.lt.u32.totalorder %s1883_s28, %s2703_s1 }
   0x8   :  { %p1889_p2 = pnand %p1887_p1, %p1884_p0 }
   0xa   :  { %1892 = shalt.err (!%p1889_p2)
}
   0xb   :  { %s1893_s10 = scalar_lea.vmem %s35_s25, 4096  ;;  %p1898_p4 = scmp.lt.s32.totalorder %s35_s25, %s35_s25 }
   0xc   :  { %p1894_p3 = scmp.ne.s32.totalorder %s35_s25, %s1893_s10  ;;  %p1899_p5 = scmp.lt.s32.totalorder %s1893_s10, %s1893_s10 }
   0xe   :  { %p1900_p6 = por %p1899_p5, %p1898_p4 }
  0x10   :  { %p1901_p7 = pnand %p1900_p6, %p1894_p3 }
  0x12   :  { %1904 = shalt.err (!%p1901_p7)
}
  0x13   :  { %s2048_s11 = smov 64   ;;  %s2049_s12 = smov 4  }
  0x14   :  { %40 = dma.hbm_to_vmem [thread:$0]  %s2703_s1, 4096, %s35_s25, [#allocation6], %s2048_s11, %s2048_s11, %s2049_s12  }
  0x15   :  { %s2050_s15 = smov [#allocation8]   ;;  %s2051_s17 = smov [#allocation2]  }
  0x16   :  { %s58_s16 = sshll.u32 %s2050_s15, 4  ;;  %s22_s18 = sshll.u32 %s2051_s17, 4  ;;  %s59_s16 = int_to_ptr.vmem [resolvable:$true] %s58_s16  ;;  %s23_s18 = int_to_ptr.vmem [resolvable:$true] %s22_s18 }
  0x17   :  { %s1905_s21 = scalar_lea.hbm %s2705_s3, 8192 }
  0x18   :  { %p1906_p8 = scmp.ne.s32.totalorder %s2705_s3, %s1905_s21  ;;  %p1909_p9 = scmp.lt.u32.totalorder %s1905_s21, %s2705_s3 }
  0x1a   :  { %p1911_p10 = pnand %p1909_p9, %p1906_p8 }
  0x1c   :  { %1914 = shalt.err (!%p1911_p10)
}
  0x1d   :  { %s1915_s1 = scalar_lea.vmem %s59_s16, 8192  ;;  %p1920_p12 = scmp.lt.s32.totalorder %s59_s16, %s59_s16 }
  0x1e   :  { %p1916_p11 = scmp.ne.s32.totalorder %s59_s16, %s1915_s1  ;;  %p1921_p13 = scmp.lt.s32.totalorder %s1915_s1, %s1915_s1 }
  0x20   :  { %p1922_p0 = por %p1921_p13, %p1920_p12 }
  0x22   :  { %p1923_p1 = pnand %p1922_p0, %p1916_p11 }
  0x24   :  { %1926 = shalt.err (!%p1923_p1)
}
  0x25   :  { %64 = dma.hbm_to_vmem [thread:$0]  %s2705_s3, 8192, %s59_s16, [#allocation9], %s2048_s11, %s2048_s11, %s2049_s12  }
  0x26   :  { %s1927_s30 = scalar_lea.hbm %s2702_s0, 256 }
  0x27   :  { %p1928_p2 = scmp.ne.s32.totalorder %s2702_s0, %s1927_s30  ;;  %p1931_p3 = scmp.lt.u32.totalorder %s1927_s30, %s2702_s0 }
  0x29   :  { %p1933_p4 = pnand %p1931_p3, %p1928_p2 }
  0x2b   :  { %1936 = shalt.err (!%p1933_p4)
}
  0x2c   :  { %s1937_s14 = scalar_lea.vmem %s23_s18, 256  ;;  %p1942_p6 = scmp.lt.s32.totalorder %s23_s18, %s23_s18 }
  0x2d   :  { %p1938_p5 = scmp.ne.s32.totalorder %s23_s18, %s1937_s14  ;;  %p1943_p7 = scmp.lt.s32.totalorder %s1937_s14, %s1937_s14 }
  0x2f   :  { %p1944_p8 = por %p1943_p7, %p1942_p6 }
  0x31   :  { %p1945_p9 = pnand %p1944_p8, %p1938_p5 }
  0x33   :  { %1948 = shalt.err (!%p1945_p9)
}
  0x34   :  { %s2052_s3 = smov 128   ;;  %s2053_s15 = smov 8  }
  0x35   :  { %28 = dma.hbm_to_vmem [thread:$0]  %s2702_s0, 256, %s23_s18, [#allocation3], %s2052_s3, %s2052_s3, %s2053_s15  }
  0x36   :  { %s2054_s19 = smov [#allocation7]   ;;  %s2055_s21 = smov [#allocation10]  }
  0x37   :  { %s46_s20 = sshll.u32 %s2054_s19, 4  ;;  %s70_s22 = sshll.u32 %s2055_s21, 4  ;;  %s47_s20 = int_to_ptr.vmem [resolvable:$true] %s46_s20  ;;  %s71_s22 = int_to_ptr.vmem [resolvable:$true] %s70_s22 }
  0x38   :  { %s1949_s26 = scalar_lea.hbm %s2704_s2, 512 }
  0x39   :  { %p1950_p10 = scmp.ne.s32.totalorder %s2704_s2, %s1949_s26  ;;  %p1953_p11 = scmp.lt.u32.totalorder %s1949_s26, %s2704_s2 }
  0x3b   :  { %p1955_p12 = pnand %p1953_p11, %p1950_p10 }
  0x3d   :  { %1958 = shalt.err (!%p1955_p12)
}
  0x3e   :  { %s1959_s0 = scalar_lea.vmem %s47_s20, 512  ;;  %p1964_p0 = scmp.lt.s32.totalorder %s47_s20, %s47_s20 }
  0x3f   :  { %p1960_p13 = scmp.ne.s32.totalorder %s47_s20, %s1959_s0  ;;  %p1965_p1 = scmp.lt.s32.totalorder %s1959_s0, %s1959_s0 }
  0x41   :  { %p1966_p2 = por %p1965_p1, %p1964_p0 }
  0x43   :  { %p1967_p3 = pnand %p1966_p2, %p1960_p13 }
  0x45   :  { %1970 = shalt.err (!%p1967_p3)
}
  0x46   :  { %52 = dma.hbm_to_vmem [thread:$0]  %s2704_s2, 512, %s47_s20, [#allocation6], %s2052_s3, %s2052_s3, %s2053_s15  }
  0x47   :  { %s1971_s9 = scalar_lea.hbm %s2706_s4, 512 }
  0x48   :  { %p1972_p4 = scmp.ne.s32.totalorder %s2706_s4, %s1971_s9  ;;  %p1975_p5 = scmp.lt.u32.totalorder %s1971_s9, %s2706_s4 }
  0x4a   :  { %p1977_p6 = pnand %p1975_p5, %p1972_p4 }
  0x4c   :  { %1980 = shalt.err (!%p1977_p6)
}
  0x4d   :  { %s1981_s17 = scalar_lea.vmem %s71_s22, 512  ;;  %p1986_p8 = scmp.lt.s32.totalorder %s71_s22, %s71_s22 }
  0x4e   :  { %p1982_p7 = scmp.ne.s32.totalorder %s71_s22, %s1981_s17  ;;  %p1987_p9 = scmp.lt.s32.totalorder %s1981_s17, %s1981_s17 }
  0x50   :  { %p1988_p10 = por %p1987_p9, %p1986_p8 }
  0x52   :  { %p1989_p11 = pnand %p1988_p10, %p1982_p7 }
  0x54   :  { %1992 = shalt.err (!%p1989_p11)
}
  0x55   :  { %76 = dma.hbm_to_vmem [thread:$0]  %s2706_s4, 512, %s71_s22, [#allocation9], %s2052_s3, %s2052_s3, %s2053_s15  }
  0x56   :  { %s2056_s20 = smov [#allocation11]   ;;  %s1993_s26 = scalar_lea.hbm %s2707_s5, 2048 }
  0x57   :  { %s82_s21 = sshll.u32 %s2056_s20, 4  ;;  %p1994_p12 = scmp.ne.s32.totalorder %s2707_s5, %s1993_s26  ;;  %s83_s21 = int_to_ptr.vmem [resolvable:$true] %s82_s21 }
  0x58   :  { %p1997_p13 = scmp.lt.u32.totalorder %s1993_s26, %s2707_s5 }
  0x5a   :  { %p1999_p0 = pnand %p1997_p13, %p1994_p12 }
  0x5c   :  { %2002 = shalt.err (!%p1999_p0)
}
  0x5d   :  { %s2003_s0 = scalar_lea.vmem %s83_s21, 2048  ;;  %p2008_p2 = scmp.lt.s32.totalorder %s83_s21, %s83_s21 }
  0x5e   :  { %p2004_p1 = scmp.ne.s32.totalorder %s83_s21, %s2003_s0  ;;  %p2009_p3 = scmp.lt.s32.totalorder %s2003_s0, %s2003_s0 }
  0x60   :  { %p2010_p4 = por %p2009_p3, %p2008_p2 }
  0x62   :  { %p2011_p5 = pnand %p2010_p4, %p2004_p1 }
  0x64   :  { %2014 = shalt.err (!%p2011_p5)
}
  0x65   :  { %88 = dma.hbm_to_vmem [thread:$0]  %s2707_s5, 2048, %s83_s21, [#allocation12], %s2048_s11, %s2048_s11, %s2049_s12  }
  0x66   :  { %2037 = dma.done.wait [#allocation3], 256  }
  0x67   :  { %2038 = vsyncadd [#allocation3], 4294967040 }
  0x68   :  { %2039 = dma.done.wait [#allocation6], 4608  }
  0x69   :  { %2040 = vsyncadd [#allocation6], 4294962688 }
  0x6a   :  { %2041 = dma.done.wait [#allocation9], 8704  }
  0x6b   :  { %2042 = vsyncadd [#allocation9], 4294958592 }
  0x6c   :  { %2043 = dma.done.wait [#allocation12], 2048  }
  0x6d   :  { %2044 = vsyncadd [#allocation12], 4294965248  ;;  %v123_v0 = vlaneseq  ;;  %v2194_v5 = vld [vmem:[#allocation2] sm:$0xff]  ;;  %v1441_v9 = vld [vmem:[#allocation5] sm:$0xff]  }
  0x6e   :  { %v1824_v10 = vld [vmem:[#allocation5 + $0x8] sm:$0xff]   ;;  %v1449_v11 = vld [vmem:[#allocation5 + $0x10] sm:$0xff]   ;;  %v1442_v16 = vunpack.c.l.bf16 %v1441_v9  ;;  %v1443_v17 = vunpack.c.h.bf16 %v1441_v9  ;;  %v1825_v20 = vld [vmem:[#allocation5 + $0x18] sm:$0xff]  }
  0x6f   :  { %v124_v1 = vshrl.u32 %v123_v0, 7  ;;  %v1446_v18 = vunpack.c.l.bf16 %v1824_v10  ;;  %v1447_v19 = vunpack.c.h.bf16 %v1824_v10  ;;  %v111_v21 = vld [vmem:[#allocation7] sm:$0xff]  ;;  %v112_v22 = vld [vmem:[#allocation7 + $0x8] sm:$0xff]  ;;  %v113_v23 = vld [vmem:[#allocation7 + $0x10] sm:$0xff]  ;;  %v1450_v24 = vunpack.c.l.bf16 %v1449_v11 }
  0x70   :  { %v1451_v25 = vunpack.c.h.bf16 %v1449_v11  ;;  %v1454_v26 = vunpack.c.l.bf16 %v1825_v20  ;;  %v1455_v27 = vunpack.c.h.bf16 %v1825_v20  ;;  %v114_v28 = vld [vmem:[#allocation7 + $0x18] sm:$0xff]  ;;  %v1457_v33 = vld [vmem:[#allocation5 + $0x20] sm:$0xff]   ;;  %v1826_v34 = vld [vmem:[#allocation5 + $0x28] sm:$0xff]  }
  0x71   :  { %v2188_v2 = vsub.s32 0, %v124_v1  ;;  %v2190_v3 = vsub.s32 1, %v124_v1  ;;  %v2192_v4 = vsub.s32 2, %v124_v1  ;;  %v2198_v7 = vsub.s32 3, %v124_v1  ;;  %v1465_v47 = vld [vmem:[#allocation5 + $0x30] sm:$0xff]   ;;  %v1827_v48 = vld [vmem:[#allocation5 + $0x38] sm:$0xff]  }
  0x72   :  { %v2200_v8 = vsub.s32 4, %v124_v1  ;;  %v2206_v14 = vsub.s32 5, %v124_v1  ;;  %v2208_v15 = vsub.s32 6, %v124_v1  ;;  %v1458_v44 = vunpack.c.l.bf16 %v1457_v33  ;;  %v1473_v60 = vld [vmem:[#allocation5 + $0x40] sm:$0xff]   ;;  %v1828_v61 = vld [vmem:[#allocation5 + $0x48] sm:$0xff]   ;;  %v1481_v20 = vld [vmem:[#allocation5 + $0x50] sm:$0xff]  }
  0x73   :  { %v126_v6 = vrot.slane %v2194_v5, %v2188_v2  ;;  %v147_v12 = vrot.slane %v2194_v5, %v2190_v3  ;;  %v168_v13 = vrot.slane %v2194_v5, %v2192_v4  ;;  %v189_v38 = vrot.slane %v2194_v5, %v2198_v7 }
  0x74   :  { %v1459_v45 = vunpack.c.h.bf16 %v1457_v33  ;;  %v1462_v46 = vunpack.c.l.bf16 %v1826_v34  ;;  %v1463_v52 = vunpack.c.h.bf16 %v1826_v34  ;;  %v2212_v56 = vsub.s32 7, %v124_v1  ;;  %v1489_v33 = vld [vmem:[#allocation5 + $0x60] sm:$0xff]   ;;  %v2225_v34 = vld [vmem:[#allocation5 + $0x68] sm:$0xff]  }
  0x75   :  { %v127_v29 = vmul.f32 %v1442_v16, %v126_v6  ;;  %v128_v30 = vmul.f32 %v1443_v17, %v126_v6  ;;  %v129_v31 = vmul.f32 %v1446_v18, %v126_v6  ;;  %v130_v32 = vmul.f32 %v1447_v19, %v126_v6 }
  0x76   :  { %v148_v35 = vmul.f32 %v1450_v24, %v147_v12  ;;  %v149_v36 = vmul.f32 %v1451_v25, %v147_v12  ;;  %v150_v37 = vmul.f32 %v1454_v26, %v147_v12  ;;  %v151_v42 = vmul.f32 %v1455_v27, %v147_v12 }
  0x77   :  { %v131_v39 = vadd.f32 %v127_v29, %v111_v21  ;;  %v132_v40 = vadd.f32 %v128_v30, %v112_v22  ;;  %v133_v41 = vadd.f32 %v129_v31, %v113_v23  ;;  %v134_v43 = vadd.f32 %v130_v32, %v114_v28  ;;  %v2216_v21 = vld [vmem:[#allocation5 + $0x58] sm:$0xff]  }
  0x78   :  { %v169_v53 = vmul.f32 %v1458_v44, %v168_v13  ;;  %v170_v54 = vmul.f32 %v1459_v45, %v168_v13  ;;  %v171_v55 = vmul.f32 %v1462_v46, %v168_v13  ;;  %v1466_v57 = vunpack.c.l.bf16 %v1465_v47 }
  0x79   :  { %v152_v49 = vadd.f32 %v148_v35, %v131_v39  ;;  %v153_v50 = vadd.f32 %v149_v36, %v132_v40  ;;  %v154_v51 = vadd.f32 %v150_v37, %v133_v41  ;;  %v1467_v58 = vunpack.c.h.bf16 %v1465_v47  ;;  %v1497_v47 = vld [vmem:[#allocation5 + $0x70] sm:$0xff]  }
  0x7a   :  { %v1470_v59 = vunpack.c.l.bf16 %v1827_v48  ;;  %v210_v62 = vrot.slane %v2194_v5, %v2200_v8  ;;  %v155_v63 = vadd.f32 %v151_v42, %v134_v43  ;;  %v172_v10 = vmul.f32 %v1463_v52, %v168_v13 }
  0x7b   :  { %v173_v0 = vadd.f32 %v169_v53, %v152_v49  ;;  %v174_v6 = vadd.f32 %v170_v54, %v153_v50  ;;  %v175_v9 = vadd.f32 %v171_v55, %v154_v51  ;;  %v190_v11 = vmul.f32 %v1466_v57, %v189_v38 }
  0x7c   :  { %v191_v12 = vmul.f32 %v1467_v58, %v189_v38  ;;  %v192_v16 = vmul.f32 %v1470_v59, %v189_v38  ;;  %v1471_v17 = vunpack.c.h.bf16 %v1827_v48  ;;  %v1474_v18 = vunpack.c.l.bf16 %v1473_v60  ;;  %v2228_v48 = vld [vmem:[#allocation5 + $0x78] sm:$0xff]  }
  0x7d   :  { %v1475_v1 = vunpack.c.h.bf16 %v1473_v60  ;;  %v1478_v19 = vunpack.c.l.bf16 %v1828_v61  ;;  %v194_v22 = vadd.f32 %v190_v11, %v173_v0  ;;  %v231_v25 = vrot.slane %v2194_v5, %v2206_v14 }
  0x7e   :  { %v195_v23 = vadd.f32 %v191_v12, %v174_v6  ;;  %v196_v24 = vadd.f32 %v192_v16, %v175_v9  ;;  %v211_v26 = vmul.f32 %v1474_v18, %v210_v62  ;;  %v2222_v13 = vrot.slane %v2194_v5, %v2208_v15  ;;  %v2239_v9 = vld [vmem:[#allocation5 + $0x88] sm:$0xff]   ;;  %v1513_v16 = vld [vmem:[#allocation5 + $0x90] sm:$0xff]  }
  0x7f   :  { %v212_v27 = vmul.f32 %v1475_v1, %v210_v62  ;;  %v213_v28 = vmul.f32 %v1478_v19, %v210_v62  ;;  %v176_v29 = vadd.f32 %v172_v10, %v155_v63  ;;  %v1482_v30 = vunpack.c.l.bf16 %v1481_v20 }
  0x80   :  { %v1483_v31 = vunpack.c.h.bf16 %v1481_v20  ;;  %v1486_v32 = vunpack.c.l.bf16 %v2216_v21  ;;  %v193_v35 = vmul.f32 %v1471_v17, %v189_v38  ;;  %v215_v36 = vadd.f32 %v211_v26, %v194_v22  ;;  %v1521_v22 = vld [vmem:[#allocation5 + $0xa0] sm:$0xff]  }
  0x81   :  { %v216_v37 = vadd.f32 %v212_v27, %v195_v23  ;;  %v217_v39 = vadd.f32 %v213_v28, %v196_v24  ;;  %v1479_v40 = vunpack.c.h.bf16 %v1828_v61  ;;  %v232_v41 = vmul.f32 %v1482_v30, %v231_v25  ;;  %v1505_v61 = vld [vmem:[#allocation5 + $0x80] sm:$0xff]  }
  0x82   :  { %v233_v42 = vmul.f32 %v1483_v31, %v231_v25  ;;  %v234_v43 = vmul.f32 %v1486_v32, %v231_v25  ;;  %v1490_v44 = vunpack.c.l.bf16 %v1489_v33  ;;  %v1491_v45 = vunpack.c.h.bf16 %v1489_v33 }
  0x83   :  { %v1494_v46 = vunpack.c.l.bf16 %v2225_v34  ;;  %v236_v49 = vadd.f32 %v232_v41, %v215_v36  ;;  %v2232_v38 = vrot.slane %v2194_v5, %v2212_v56  ;;  %v197_v52 = vadd.f32 %v193_v35, %v176_v29  ;;  %v2241_v5 = vld [vmem:[#allocation2 + $0x8] sm:$0xff] }
  0x84   :  { %v237_v50 = vadd.f32 %v233_v42, %v216_v37  ;;  %v238_v51 = vadd.f32 %v234_v43, %v217_v39  ;;  %v253_v53 = vmul.f32 %v1490_v44, %v2222_v13  ;;  %v254_v54 = vmul.f32 %v1491_v45, %v2222_v13  ;;  %v1529_v42 = vld [vmem:[#allocation5 + $0xb0] sm:$0xff]  }
  0x85   :  { %v255_v55 = vmul.f32 %v1494_v46, %v2222_v13  ;;  %v214_v57 = vmul.f32 %v1479_v40, %v210_v62  ;;  %v1498_v58 = vunpack.c.l.bf16 %v1497_v47  ;;  %v1499_v59 = vunpack.c.h.bf16 %v1497_v47 }
  0x86   :  { %v1502_v60 = vunpack.c.l.bf16 %v2228_v48  ;;  %v1487_v63 = vunpack.c.h.bf16 %v2216_v21  ;;  %v257_v0 = vadd.f32 %v253_v53, %v236_v49  ;;  %v258_v6 = vadd.f32 %v254_v54, %v237_v50  ;;  %v2247_v21 = vld [vmem:[#allocation5 + $0x98] sm:$0xff]  }
  0x87   :  { %v259_v10 = vadd.f32 %v255_v55, %v238_v51  ;;  %v274_v11 = vmul.f32 %v1498_v58, %v2232_v38  ;;  %v275_v12 = vmul.f32 %v1499_v59, %v2232_v38  ;;  %v1506_v17 = vunpack.c.l.bf16 %v1505_v61 }
  0x88   :  { %v276_v62 = vmul.f32 %v1502_v60, %v2232_v38  ;;  %v1507_v18 = vunpack.c.h.bf16 %v1505_v61  ;;  %v218_v1 = vadd.f32 %v214_v57, %v197_v52  ;;  %v1510_v20 = vunpack.c.l.bf16 %v2239_v9 }
  0x89   :  { %v278_v19 = vadd.f32 %v274_v11, %v257_v0  ;;  %v279_v23 = vadd.f32 %v275_v12, %v258_v6  ;;  %v294_v24 = vrot.slane %v2241_v5, %v2188_v2  ;;  %v1514_v26 = vunpack.c.l.bf16 %v1513_v16  ;;  %v1545_v12 = vld [vmem:[#allocation5 + $0xd0] sm:$0xff]  }
  0x8a   :  { %v1515_v27 = vunpack.c.h.bf16 %v1513_v16  ;;  %v235_v28 = vmul.f32 %v1487_v63, %v231_v25  ;;  %v1495_v29 = vunpack.c.h.bf16 %v2225_v34  ;;  %v280_v30 = vadd.f32 %v276_v62, %v259_v10  ;;  %v2259_v34 = vld [vmem:[#allocation5 + $0xa8] sm:$0xff]   ;;  %v2275_v63 = vld [vmem:[#allocation5 + $0xb8] sm:$0xff]  }
  0x8b   :  { %v2254_v31 = vrot.slane %v2241_v5, %v2190_v3  ;;  %v295_v32 = vmul.f32 %v1506_v17, %v294_v24  ;;  %v296_v33 = vmul.f32 %v1507_v18, %v294_v24  ;;  %v1518_v35 = vunpack.c.l.bf16 %v2247_v21 }
  0x8c   :  { %v1522_v36 = vunpack.c.l.bf16 %v1521_v22  ;;  %v297_v37 = vmul.f32 %v1510_v20, %v294_v24  ;;  %v1523_v41 = vunpack.c.h.bf16 %v1521_v22  ;;  %v239_v44 = vadd.f32 %v235_v28, %v218_v1  ;;  %v2288_v28 = vld [vmem:[#allocation5 + $0xc8] sm:$0xff]  }
  0x8d   :  { %v316_v39 = vmul.f32 %v1514_v26, %v2254_v31  ;;  %v317_v40 = vmul.f32 %v1515_v27, %v2254_v31  ;;  %v299_v25 = vadd.f32 %v295_v32, %v278_v19  ;;  %v300_v43 = vadd.f32 %v296_v33, %v279_v23  ;;  %v1553_v23 = vld [vmem:[#allocation5 + $0xe0] sm:$0xff]  }
  0x8e   :  { %v256_v45 = vmul.f32 %v1495_v29, %v2222_v13  ;;  %v1503_v46 = vunpack.c.h.bf16 %v2228_v48  ;;  %v2265_v47 = vrot.slane %v2241_v5, %v2192_v4  ;;  %v318_v49 = vmul.f32 %v1518_v35, %v2254_v31  ;;  %v1537_v48 = vld [vmem:[#allocation5 + $0xc0] sm:$0xff]  }
  0x8f   :  { %v320_v50 = vadd.f32 %v316_v39, %v299_v25  ;;  %v321_v51 = vadd.f32 %v317_v40, %v300_v43  ;;  %v1530_v52 = vunpack.c.l.bf16 %v1529_v42  ;;  %v301_v53 = vadd.f32 %v297_v37, %v280_v30 }
  0x90   :  { %v1526_v54 = vunpack.c.l.bf16 %v2259_v34  ;;  %v337_v55 = vmul.f32 %v1522_v36, %v2265_v47  ;;  %v338_v57 = vmul.f32 %v1523_v41, %v2265_v47  ;;  %v1531_v58 = vunpack.c.h.bf16 %v1529_v42  ;;  %v1561_v41 = vld [vmem:[#allocation5 + $0xf0] sm:$0xff]  }
  0x91   :  { %v2273_v13 = vrot.slane %v2241_v5, %v2198_v7  ;;  %v260_v59 = vadd.f32 %v256_v45, %v239_v44  ;;  %v277_v0 = vmul.f32 %v1503_v46, %v2232_v38  ;;  %v1511_v6 = vunpack.c.h.bf16 %v2239_v9  ;;  %v2300_v44 = vld [vmem:[#allocation5 + $0xd8] sm:$0xff]  }
  0x92   :  { %v341_v60 = vadd.f32 %v337_v55, %v320_v50  ;;  %v342_v61 = vadd.f32 %v338_v57, %v321_v51  ;;  %v322_v62 = vadd.f32 %v318_v49, %v301_v53  ;;  %v339_v16 = vmul.f32 %v1526_v54, %v2265_v47 }
  0x93   :  { %v358_v10 = vmul.f32 %v1530_v52, %v2273_v13  ;;  %v359_v11 = vmul.f32 %v1531_v58, %v2273_v13  ;;  %v1538_v17 = vunpack.c.l.bf16 %v1537_v48  ;;  %v1539_v18 = vunpack.c.h.bf16 %v1537_v48 }
  0x94   :  { %v1534_v1 = vunpack.c.l.bf16 %v2275_v63  ;;  %v2285_v22 = vrot.slane %v2241_v5, %v2200_v8  ;;  %v1546_v38 = vunpack.c.l.bf16 %v1545_v12  ;;  %v1547_v9 = vunpack.c.h.bf16 %v1545_v12 }
  0x95   :  { %v362_v19 = vadd.f32 %v358_v10, %v341_v60  ;;  %v363_v20 = vadd.f32 %v359_v11, %v342_v61  ;;  %v281_v26 = vadd.f32 %v277_v0, %v260_v59  ;;  %v1519_v27 = vunpack.c.h.bf16 %v2247_v21  ;;  %v1569_v61 = vld [vmem:[#allocation8] sm:$0xff]   ;;  %v1577_v10 = vld [vmem:[#allocation8 + $0x10] sm:$0xff]  }
  0x96   :  { %2712 = vst [vmem:[#allocation19_spill] sm:$0xff] %v2285_v22  ;;  %v2292_v29 = vrot.slane %v2241_v5, %v2206_v14  ;;  %v298_v30 = vmul.f32 %v1511_v6, %v294_v24  ;;  %v343_v32 = vadd.f32 %v339_v16, %v322_v62  ;;  %v379_v33 = vmul.f32 %v1538_v17, %v2285_v22  ;;  %v1840_v6 = vld [vmem:[#allocation8 + $0x8] sm:$0xff]  }
  0x97   :  { %v380_v35 = vmul.f32 %v1539_v18, %v2285_v22  ;;  %v1554_v39 = vunpack.c.l.bf16 %v1553_v23  ;;  %v1555_v40 = vunpack.c.h.bf16 %v1553_v23  ;;  %v360_v21 = vmul.f32 %v1534_v1, %v2273_v13 }
  0x98   :  { %2713 = vst [vmem:[#allocation20_spill] sm:$0xff] %v2292_v29  ;;  %v400_v36 = vmul.f32 %v1546_v38, %v2292_v29  ;;  %v401_v37 = vmul.f32 %v1547_v9, %v2292_v29  ;;  %v1542_v42 = vunpack.c.l.bf16 %v2288_v28  ;;  %v383_v25 = vadd.f32 %v379_v33, %v362_v19  ;;  %v1842_v38 = vld [vmem:[#allocation8 + $0x28] sm:$0xff]  }
  0x99   :  { %v384_v43 = vadd.f32 %v380_v35, %v363_v20  ;;  %v319_v24 = vmul.f32 %v1519_v27, %v2254_v31  ;;  %v2305_v45 = vrot.slane %v2241_v5, %v2208_v15  ;;  %v302_v46 = vadd.f32 %v298_v30, %v281_v26  ;;  %v1585_v20 = vld [vmem:[#allocation8 + $0x20] sm:$0xff]  }
  0x9a   :  { %v404_v49 = vadd.f32 %v400_v36, %v383_v25  ;;  %v1562_v51 = vunpack.c.l.bf16 %v1561_v41  ;;  %v1527_v52 = vunpack.c.h.bf16 %v2259_v34  ;;  %v1550_v53 = vunpack.c.l.bf16 %v2300_v44  ;;  %v1843_v36 = vld [vmem:[#allocation8 + $0x38] sm:$0xff]  }
  0x9b   :  { %v405_v50 = vadd.f32 %v401_v37, %v384_v43  ;;  %v421_v54 = vmul.f32 %v1554_v39, %v2305_v45  ;;  %v422_v55 = vmul.f32 %v1555_v40, %v2305_v45  ;;  %v364_v57 = vadd.f32 %v360_v21, %v343_v32  ;;  %v454_v21 = vld [vmem:[#allocation10] sm:$0xff] }
  0x9c   :  { %v381_v58 = vmul.f32 %v1542_v42, %v2285_v22  ;;  %v1563_v31 = vunpack.c.h.bf16 %v1561_v41  ;;  %v2314_v48 = vrot.slane %v2241_v5, %v2212_v56  ;;  %v2318_v11 = vadd.f32 %v319_v24, %v302_v46  ;;  %v1841_v5 = vld [vmem:[#allocation8 + $0x18] sm:$0xff]   ;;  %v455_v46 = vld [vmem:[#allocation10 + $0x8] sm:$0xff] }
  0x9d   :  { %v425_v59 = vadd.f32 %v421_v54, %v404_v49  ;;  %v426_v60 = vadd.f32 %v422_v55, %v405_v50  ;;  %v2321_v12 = vmul.f32 %v1527_v52, %v2265_v47  ;;  %v2325_v16 = vmul.f32 %v1550_v53, %v2292_v29  ;;  %v1593_v47 = vld [vmem:[#allocation8 + $0x30] sm:$0xff]   ;;  %v457_v50 = vld [vmem:[#allocation10 + $0x18] sm:$0xff] }
  0x9e   :  { %v442_v0 = vmul.f32 %v1562_v51, %v2314_v48  ;;  %v443_v34 = vmul.f32 %v1563_v31, %v2314_v48  ;;  %v2327_v17 = vadd.f32 %v381_v58, %v364_v57  ;;  %v1570_v1 = vunpack.c.l.bf16 %v1569_v61  ;;  %v456_v49 = vld [vmem:[#allocation10 + $0x10] sm:$0xff] }
  0x9f   :  { %v1571_v19 = vunpack.c.h.bf16 %v1569_v61  ;;  %v1574_v23 = vunpack.c.l.bf16 %v1840_v6  ;;  %v1575_v26 = vunpack.c.h.bf16 %v1840_v6  ;;  %v1578_v27 = vunpack.c.l.bf16 %v1577_v10 }
  0xa0   :  { %v446_v18 = vadd.f32 %v442_v0, %v425_v59  ;;  %v2329_v9 = vadd.f32 %v443_v34, %v426_v60  ;;  %v1579_v32 = vunpack.c.h.bf16 %v1577_v10  ;;  %v1582_v33 = vunpack.c.l.bf16 %v1841_v5 }
  0xa1   :  { %v1583_v35 = vunpack.c.h.bf16 %v1841_v5  ;;  %v1586_v37 = vunpack.c.l.bf16 %v1585_v20  ;;  %v1587_v39 = vunpack.c.h.bf16 %v1585_v20  ;;  %v1590_v40 = vunpack.c.l.bf16 %v1842_v38 }
  0xa2   :  { %v2331_v30 = vmax.f32 %v446_v18, 0.0  ;;  %v1591_v41 = vunpack.c.h.bf16 %v1842_v38  ;;  %v1594_v24 = vunpack.c.l.bf16 %v1593_v47  ;;  %v1595_v51 = vunpack.c.h.bf16 %v1593_v47 }
  0xa3   :  { %v1598_v52 = vunpack.c.l.bf16 %v1843_v36  ;;  %v1599_v53 = vunpack.c.h.bf16 %v1843_v36 }
  0xa4   :  { %v469_v42 = vrot.slane %v2331_v30, %v2188_v2  ;;  %v490_v25 = vrot.slane %v2331_v30, %v2190_v3  ;;  %v511_v43 = vrot.slane %v2331_v30, %v2192_v4  ;;  %v532_v54 = vrot.slane %v2331_v30, %v2198_v7 }
  0xa6   :  { %v470_v55 = vmul.f32 %v1570_v1, %v469_v42  ;;  %v471_v57 = vmul.f32 %v1571_v19, %v469_v42  ;;  %v472_v58 = vmul.f32 %v1574_v23, %v469_v42  ;;  %v473_v31 = vmul.f32 %v1575_v26, %v469_v42  ;;  %v1601_v1 = vld [vmem:[#allocation8 + $0x40] sm:$0xff]   ;;  %v1844_v19 = vld [vmem:[#allocation8 + $0x48] sm:$0xff]  }
  0xa7   :  { %v491_v59 = vmul.f32 %v1578_v27, %v490_v25  ;;  %v492_v60 = vmul.f32 %v1579_v32, %v490_v25  ;;  %v493_v61 = vmul.f32 %v1582_v33, %v490_v25  ;;  %v494_v0 = vmul.f32 %v1583_v35, %v490_v25  ;;  %v1609_v25 = vld [vmem:[#allocation8 + $0x50] sm:$0xff]  }
  0xa8   :  { %v474_v34 = vadd.f32 %v470_v55, %v454_v21  ;;  %v475_v6 = vadd.f32 %v471_v57, %v455_v46  ;;  %v476_v10 = vadd.f32 %v472_v58, %v456_v49  ;;  %v477_v5 = vadd.f32 %v473_v31, %v457_v50  ;;  %v1845_v46 = vld [vmem:[#allocation8 + $0x58] sm:$0xff]   ;;  %v2345_v58 = vld [vmem:[#allocation5 + $0xe8] sm:$0xff]  }
  0xa9   :  { %v512_v18 = vmul.f32 %v1586_v37, %v511_v43  ;;  %v513_v20 = vmul.f32 %v1587_v39, %v511_v43  ;;  %v514_v38 = vmul.f32 %v1590_v40, %v511_v43  ;;  %v515_v47 = vmul.f32 %v1591_v41, %v511_v43  ;;  %v1617_v43 = vld [vmem:[#allocation8 + $0x60] sm:$0xff]  }
  0xaa   :  { %v495_v36 = vadd.f32 %v491_v59, %v474_v34  ;;  %v496_v62 = vadd.f32 %v492_v60, %v475_v6  ;;  %v497_v29 = vadd.f32 %v493_v61, %v476_v10  ;;  %v498_v22 = vadd.f32 %v494_v0, %v477_v5  ;;  %v1846_v0 = vld [vmem:[#allocation8 + $0x68] sm:$0xff]  }
  0xab   :  { %v533_v23 = vmul.f32 %v1594_v24, %v532_v54  ;;  %v534_v26 = vmul.f32 %v1595_v51, %v532_v54  ;;  %v535_v27 = vmul.f32 %v1598_v52, %v532_v54  ;;  %v536_v32 = vmul.f32 %v1599_v53, %v532_v54 }
  0xac   :  { %v516_v33 = vadd.f32 %v512_v18, %v495_v36  ;;  %v517_v35 = vadd.f32 %v513_v20, %v496_v62  ;;  %v518_v21 = vadd.f32 %v514_v38, %v497_v29  ;;  %v519_v42 = vadd.f32 %v515_v47, %v498_v22  ;;  %v1625_v18 = vld [vmem:[#allocation8 + $0x70] sm:$0xff]  }
  0xad   :  { %v1602_v37 = vunpack.c.l.bf16 %v1601_v1  ;;  %v1603_v39 = vunpack.c.h.bf16 %v1601_v1  ;;  %v1606_v40 = vunpack.c.l.bf16 %v1844_v19  ;;  %v1607_v41 = vunpack.c.h.bf16 %v1844_v19 }
  0xae   :  { %v537_v49 = vadd.f32 %v533_v23, %v516_v33  ;;  %v538_v50 = vadd.f32 %v534_v26, %v517_v35  ;;  %v539_v55 = vadd.f32 %v535_v27, %v518_v21  ;;  %v540_v57 = vadd.f32 %v536_v32, %v519_v42  ;;  %v1847_v27 = vld [vmem:[#allocation8 + $0x78] sm:$0xff]  }
  0xaf   :  { %v553_v24 = vrot.slane %v2331_v30, %v2200_v8  ;;  %v1610_v51 = vunpack.c.l.bf16 %v1609_v25  ;;  %v1611_v52 = vunpack.c.h.bf16 %v1609_v25  ;;  %v1614_v53 = vunpack.c.l.bf16 %v1845_v46 }
  0xb0   :  { %v1615_v62 = vunpack.c.h.bf16 %v1845_v46  ;;  %v574_v22 = vrot.slane %v2331_v30, %v2206_v14  ;;  %v1618_v29 = vunpack.c.l.bf16 %v1617_v43  ;;  %v1619_v54 = vunpack.c.h.bf16 %v1617_v43 }
  0xb1   :  { %v554_v31 = vmul.f32 %v1602_v37, %v553_v24  ;;  %v555_v59 = vmul.f32 %v1603_v39, %v553_v24  ;;  %v556_v60 = vmul.f32 %v1606_v40, %v553_v24  ;;  %v557_v61 = vmul.f32 %v1607_v41, %v553_v24 }
  0xb2   :  { %v575_v34 = vmul.f32 %v1610_v51, %v574_v22  ;;  %v576_v6 = vmul.f32 %v1611_v52, %v574_v22  ;;  %v577_v10 = vmul.f32 %v1614_v53, %v574_v22  ;;  %v578_v5 = vmul.f32 %v1615_v62, %v574_v22  ;;  %v1641_v22 = vld [vmem:[#allocation8 + $0x90] sm:$0xff]  }
  0xb3   :  { %v558_v20 = vadd.f32 %v554_v31, %v537_v49  ;;  %v559_v38 = vadd.f32 %v555_v59, %v538_v50  ;;  %v560_v47 = vadd.f32 %v556_v60, %v539_v55  ;;  %v561_v36 = vadd.f32 %v557_v61, %v540_v57  ;;  %v1633_v49 = vld [vmem:[#allocation8 + $0x80] sm:$0xff]   ;;  %v1848_v50 = vld [vmem:[#allocation8 + $0x88] sm:$0xff]  }
  0xb4   :  { %v1558_v1 = vunpack.c.l.bf16 %v2345_v58  ;;  %v1622_v19 = vunpack.c.l.bf16 %v1846_v0  ;;  %v1623_v23 = vunpack.c.h.bf16 %v1846_v0  ;;  %v595_v26 = vrot.slane %v2331_v30, %v2208_v15 }
  0xb5   :  { %v579_v32 = vadd.f32 %v575_v34, %v558_v20  ;;  %v580_v33 = vadd.f32 %v576_v6, %v559_v38  ;;  %v581_v35 = vadd.f32 %v577_v10, %v560_v47  ;;  %v1626_v21 = vunpack.c.l.bf16 %v1625_v18  ;;  %v1649_v6 = vld [vmem:[#allocation8 + $0xa0] sm:$0xff]   ;;  %v2360_v38 = vld [vmem:[#allocation5 + $0xf8] sm:$0xff]  }
  0xb6   :  { %v2351_v42 = vmax.f32 %v2329_v9, 0.0  ;;  %v596_v25 = vmul.f32 %v1618_v29, %v595_v26  ;;  %v597_v46 = vmul.f32 %v1619_v54, %v595_v26  ;;  %v598_v37 = vmul.f32 %v1622_v19, %v595_v26  ;;  %v1849_v29 = vld [vmem:[#allocation8 + $0x98] sm:$0xff]  }
  0xb7   :  { %v582_v39 = vadd.f32 %v578_v5, %v561_v36  ;;  %v1627_v40 = vunpack.c.h.bf16 %v1625_v18  ;;  %v1630_v41 = vunpack.c.l.bf16 %v1847_v27  ;;  %v616_v43 = vrot.slane %v2331_v30, %v2212_v56 }
  0xb8   :  { %v599_v55 = vmul.f32 %v1623_v23, %v595_v26  ;;  %v600_v57 = vadd.f32 %v596_v25, %v579_v32  ;;  %v601_v24 = vadd.f32 %v597_v46, %v580_v33  ;;  %v602_v51 = vadd.f32 %v598_v37, %v581_v35  ;;  %v1657_v25 = vld [vmem:[#allocation8 + $0xb0] sm:$0xff]  }
  0xb9   :  { %v1631_v52 = vunpack.c.h.bf16 %v1847_v27  ;;  %v617_v53 = vmul.f32 %v1626_v21, %v616_v43  ;;  %v618_v62 = vmul.f32 %v1627_v40, %v616_v43  ;;  %v619_v9 = vmul.f32 %v1630_v41, %v616_v43  ;;  %v2364_v27 = vld [vmem:[#allocation8 + $0xa8] sm:$0xff]  }
  0xba   :  { %v406_v54 = vadd.f32 %v2325_v16, %v2327_v17  ;;  %v1634_v31 = vunpack.c.l.bf16 %v1633_v49  ;;  %v1635_v59 = vunpack.c.h.bf16 %v1633_v49  ;;  %v1638_v60 = vunpack.c.l.bf16 %v1848_v50 }
  0xbb   :  { %v423_v30 = vmul.f32 %v1558_v1, %v2305_v45  ;;  %v621_v61 = vadd.f32 %v617_v53, %v600_v57  ;;  %v622_v0 = vadd.f32 %v618_v62, %v601_v24  ;;  %v623_v34 = vadd.f32 %v619_v9, %v602_v51 }
  0xbc   :  { %v637_v10 = vrot.slane %v2351_v42, %v2188_v2  ;;  %v1642_v5 = vunpack.c.l.bf16 %v1641_v22  ;;  %v1643_v18 = vunpack.c.h.bf16 %v1641_v22  ;;  %v1646_v20 = vunpack.c.l.bf16 %v1849_v29 }
  0xbd   :  { %v603_v47 = vadd.f32 %v599_v55, %v582_v39  ;;  %v620_v36 = vmul.f32 %v1631_v52, %v616_v43  ;;  %v1639_v16 = vunpack.c.h.bf16 %v1848_v50  ;;  %v658_v17 = vrot.slane %v2351_v42, %v2190_v3  ;;  %v2370_v55 = vld [vmem:[#allocation8 + $0xb8] sm:$0xff]  }
  0xbe   :  { %v638_v19 = vmul.f32 %v1634_v31, %v637_v10  ;;  %v639_v1 = vmul.f32 %v1635_v59, %v637_v10  ;;  %v640_v23 = vmul.f32 %v1638_v60, %v637_v10  ;;  %v1650_v26 = vunpack.c.l.bf16 %v1649_v6 }
  0xbf   :  { %v659_v32 = vmul.f32 %v1642_v5, %v658_v17  ;;  %v660_v33 = vmul.f32 %v1643_v18, %v658_v17  ;;  %v661_v35 = vmul.f32 %v1646_v20, %v658_v17  ;;  %v1651_v21 = vunpack.c.h.bf16 %v1649_v6 }
  0xc0   :  { %v1566_v46 = vunpack.c.l.bf16 %v2360_v38  ;;  %v642_v37 = vadd.f32 %v638_v19, %v621_v61  ;;  %v643_v39 = vadd.f32 %v639_v1, %v622_v0  ;;  %v644_v40 = vadd.f32 %v640_v23, %v623_v34  ;;  %v1665_v61 = vld [vmem:[#allocation8 + $0xc0] sm:$0xff]   ;;  %v2375_v0 = vld [vmem:[#allocation8 + $0xc8] sm:$0xff]   ;;  %v2379_v23 = vld [vmem:[#allocation8 + $0xd8] sm:$0xff]  }
  0xc1   :  { %v624_v41 = vadd.f32 %v620_v36, %v603_v47  ;;  %v1647_v43 = vunpack.c.h.bf16 %v1849_v29  ;;  %v1654_v49 = vunpack.c.l.bf16 %v2364_v27  ;;  %v679_v50 = vrot.slane %v2351_v42, %v2192_v4 }
  0xc2   :  { %v663_v57 = vadd.f32 %v659_v32, %v642_v37  ;;  %v664_v24 = vadd.f32 %v660_v33, %v643_v39  ;;  %v665_v51 = vadd.f32 %v661_v35, %v644_v40  ;;  %v1658_v52 = vunpack.c.l.bf16 %v1657_v25  ;;  %v1681_v39 = vld [vmem:[#allocation8 + $0xe0] sm:$0xff]  }
  0xc3   :  { %v641_v53 = vmul.f32 %v1639_v16, %v637_v10  ;;  %v680_v62 = vmul.f32 %v1650_v26, %v679_v50  ;;  %v681_v9 = vmul.f32 %v1651_v21, %v679_v50  ;;  %v682_v22 = vmul.f32 %v1654_v49, %v679_v50  ;;  %v1673_v16 = vld [vmem:[#allocation8 + $0xd0] sm:$0xff]  }
  0xc4   :  { %v427_v31 = vadd.f32 %v423_v30, %v406_v54  ;;  %v1659_v59 = vunpack.c.h.bf16 %v1657_v25  ;;  %v1662_v60 = vunpack.c.l.bf16 %v2370_v55  ;;  %v700_v29 = vrot.slane %v2351_v42, %v2198_v7 }
  0xc5   :  { %v444_v34 = vmul.f32 %v1566_v46, %v2314_v48  ;;  %v662_v6 = vmul.f32 %v1647_v43, %v658_v17  ;;  %v684_v5 = vadd.f32 %v680_v62, %v663_v57  ;;  %v685_v18 = vadd.f32 %v681_v9, %v664_v24 }
  0xc6   :  { %v686_v20 = vadd.f32 %v682_v22, %v665_v51  ;;  %v701_v10 = vmul.f32 %v1658_v52, %v700_v29  ;;  %v702_v47 = vmul.f32 %v1659_v59, %v700_v29  ;;  %v703_v36 = vmul.f32 %v1662_v60, %v700_v29  ;;  %v2401_v52 = vld [vmem:[#allocation8 + $0xe8] sm:$0xff]  }
  0xc7   :  { %v645_v54 = vadd.f32 %v641_v53, %v624_v41  ;;  %v1666_v30 = vunpack.c.l.bf16 %v1665_v61  ;;  %v1667_v19 = vunpack.c.h.bf16 %v1665_v61  ;;  %v1670_v1 = vunpack.c.l.bf16 %v2375_v0  ;;  %v1689_v53 = vld [vmem:[#allocation8 + $0xf0] sm:$0xff]  }
  0xc8   :  { %v344_v26 = vadd.f32 %v2321_v12, %v2318_v11  ;;  %v2714_v17 = vunpack.c.h.bf16 %v2275_v63  ;;  %v1655_v33 = vunpack.c.h.bf16 %v2364_v27  ;;  %v705_v35 = vadd.f32 %v701_v10, %v684_v5 }
  0xc9   :  { %v706_v21 = vadd.f32 %v702_v47, %v685_v18  ;;  %v2389_v25 = vrot.slane %v2351_v42, %v2200_v8  ;;  %v1674_v46 = vunpack.c.l.bf16 %v1673_v16  ;;  %v1675_v37 = vunpack.c.h.bf16 %v1673_v16  ;;  %v2416_v47 = vld [vmem:[#allocation8 + $0xf8] sm:$0xff]  }
  0xca   :  { %v361_v32 = vmul.f32 %v2714_v17, %v2273_v13  ;;  %v448_v40 = vadd.f32 %v444_v34, %v427_v31  ;;  %v707_v41 = vadd.f32 %v703_v36, %v686_v20  ;;  %v1678_v43 = vunpack.c.l.bf16 %v2379_v23 }
  0xcb   :  { %v2394_v11 = vrot.slane %v2351_v42, %v2206_v14  ;;  %v666_v13 = vadd.f32 %v662_v6, %v645_v54  ;;  %v722_v63 = vmul.f32 %v1666_v30, %v2389_v25  ;;  %v723_v12 = vmul.f32 %v1667_v19, %v2389_v25  ;;  %v1697_v19 = vld [vmem:[#allocation8 + $0x100] sm:$0xff]  }
  0xcc   :  { %v724_v27 = vmul.f32 %v1670_v1, %v2389_v25  ;;  %v1682_v24 = vunpack.c.l.bf16 %v1681_v39  ;;  %v1683_v51 = vunpack.c.h.bf16 %v1681_v39  ;;  %v683_v62 = vmul.f32 %v1655_v33, %v679_v50 }
  0xcd   :  { %v743_v49 = vmul.f32 %v1674_v46, %v2394_v11  ;;  %v744_v57 = vmul.f32 %v1675_v37, %v2394_v11  ;;  %v1663_v9 = vunpack.c.h.bf16 %v2370_v55  ;;  %v726_v22 = vadd.f32 %v722_v63, %v705_v35 }
  0xce   :  { %v727_v31 = vadd.f32 %v723_v12, %v706_v21  ;;  %v1543_v59 = vunpack.c.h.bf16 %v2288_v28  ;;  %v728_v60 = vadd.f32 %v724_v27, %v707_v41  ;;  %v745_v61 = vmul.f32 %v1678_v43, %v2394_v11 }
  0xcf   :  { %v2408_v34 = vrot.slane %v2351_v42, %v2208_v15  ;;  %v747_v6 = vadd.f32 %v743_v49, %v726_v22  ;;  %v1686_v18 = vunpack.c.l.bf16 %v2401_v52  ;;  %v1690_v20 = vunpack.c.l.bf16 %v1689_v53  ;;  %v2430_v49 = vld [vmem:[#allocation8 + $0x108] sm:$0xff]  }
  0xd0   :  { %v748_v5 = vadd.f32 %v744_v57, %v727_v31  ;;  %v1551_v50 = vunpack.c.h.bf16 %v2300_v44  ;;  %v2412_v10 = vmax.f32 %v448_v40, 0.0  ;;  %v687_v36 = vadd.f32 %v683_v62, %v666_v13  ;;  %v2715_v40 = vld [vmem:[#allocation19_spill] sm:$0xff]  ;;  %v2716_v13 = vld [vmem:[#allocation20_spill] sm:$0xff] }
  0xd1   :  { %v764_v55 = vmul.f32 %v1682_v24, %v2408_v34  ;;  %v765_v28 = vmul.f32 %v1683_v51, %v2408_v34  ;;  %v704_v16 = vmul.f32 %v1663_v9, %v700_v29  ;;  %v1691_v54 = vunpack.c.h.bf16 %v1689_v53  ;;  %v1705_v29 = vld [vmem:[#allocation8 + $0x110] sm:$0xff]  }
  0xd2   :  { %v2420_v30 = vrot.slane %v2351_v42, %v2212_v56  ;;  %v1671_v1 = vunpack.c.h.bf16 %v2375_v0  ;;  %v749_v17 = vadd.f32 %v745_v61, %v728_v60  ;;  %v766_v35 = vmul.f32 %v1686_v18, %v2408_v34  ;;  %v2445_v61 = vld [vmem:[#allocation8 + $0x118] sm:$0xff]  }
  0xd3   :  { %v768_v44 = vadd.f32 %v764_v55, %v747_v6  ;;  %v769_v33 = vadd.f32 %v765_v28, %v748_v5  ;;  %v1694_v21 = vunpack.c.l.bf16 %v2416_v47  ;;  %v365_v39 = vadd.f32 %v361_v32, %v344_v26  ;;  %v1713_v26 = vld [vmem:[#allocation8 + $0x120] sm:$0xff]  }
  0xd4   :  { %v785_v46 = vmul.f32 %v1690_v20, %v2420_v30  ;;  %v786_v37 = vmul.f32 %v1691_v54, %v2420_v30  ;;  %v382_v41 = vmul.f32 %v1543_v59, %v2715_v40  ;;  %v1698_v42 = vunpack.c.l.bf16 %v1697_v19  ;;  %v1721_v20 = vld [vmem:[#allocation8 + $0x130] sm:$0xff]  }
  0xd5   :  { %v1699_v43 = vunpack.c.h.bf16 %v1697_v19  ;;  %v403_v63 = vmul.f32 %v1551_v50, %v2716_v13  ;;  %v708_v0 = vadd.f32 %v704_v16, %v687_v36  ;;  %v1679_v12 = vunpack.c.h.bf16 %v2379_v23 }
  0xd6   :  { %v789_v27 = vadd.f32 %v785_v46, %v768_v44  ;;  %v790_v57 = vadd.f32 %v786_v37, %v769_v33  ;;  %v2434_v24 = vrot.slane %v2412_v10, %v2188_v2  ;;  %v1706_v51 = vunpack.c.l.bf16 %v1705_v29  ;;  %v2458_v46 = vld [vmem:[#allocation8 + $0x128] sm:$0xff]  }
  0xd7   :  { %v1707_v53 = vunpack.c.h.bf16 %v1705_v29  ;;  %v725_v32 = vmul.f32 %v1671_v1, %v2389_v25  ;;  %v770_v62 = vadd.f32 %v766_v35, %v749_v17  ;;  %v787_v9 = vmul.f32 %v1694_v21, %v2420_v30 }
  0xd8   :  { %v2440_v22 = vrot.slane %v2412_v10, %v2190_v3  ;;  %v386_v23 = vadd.f32 %v382_v41, %v365_v39  ;;  %v1702_v31 = vunpack.c.l.bf16 %v2430_v49  ;;  %v806_v59 = vmul.f32 %v1698_v42, %v2434_v24  ;;  %v1729_v42 = vld [vmem:[#allocation8 + $0x140] sm:$0xff]  }
  0xd9   :  { %v807_v60 = vmul.f32 %v1699_v43, %v2434_v24  ;;  %v1714_v5 = vunpack.c.l.bf16 %v1713_v26  ;;  %v1715_v18 = vunpack.c.h.bf16 %v1713_v26  ;;  %v1559_v50 = vunpack.c.h.bf16 %v2345_v58 }
  0xda   :  { %v827_v6 = vmul.f32 %v1706_v51, %v2440_v22  ;;  %v828_v25 = vmul.f32 %v1707_v53, %v2440_v22  ;;  %v746_v55 = vmul.f32 %v1679_v12, %v2394_v11  ;;  %v810_v28 = vadd.f32 %v806_v59, %v789_v27  ;;  %v2474_v53 = vld [vmem:[#allocation8 + $0x138] sm:$0xff]  }
  0xdb   :  { %v811_v36 = vadd.f32 %v807_v60, %v790_v57  ;;  %v729_v16 = vadd.f32 %v725_v32, %v708_v0  ;;  %v791_v54 = vadd.f32 %v787_v9, %v770_v62  ;;  %v1710_v19 = vunpack.c.l.bf16 %v2445_v61  ;;  %v1737_v57 = vld [vmem:[#allocation8 + $0x150] sm:$0xff]  }
  0xdc   :  { %v2454_v1 = vrot.slane %v2412_v10, %v2192_v4  ;;  %v808_v17 = vmul.f32 %v1702_v31, %v2434_v24  ;;  %v831_v44 = vadd.f32 %v827_v6, %v810_v28  ;;  %v1722_v35 = vunpack.c.l.bf16 %v1721_v20  ;;  %v2490_v28 = vld [vmem:[#allocation8 + $0x148] sm:$0xff]  }
  0xdd   :  { %v832_v33 = vadd.f32 %v828_v25, %v811_v36  ;;  %v407_v21 = vadd.f32 %v403_v63, %v386_v23  ;;  %v1687_v58 = vunpack.c.h.bf16 %v2401_v52  ;;  %v424_v29 = vmul.f32 %v1559_v50, %v2305_v45  ;;  %v1745_v25 = vld [vmem:[#allocation8 + $0x160] sm:$0xff]  }
  0xde   :  { %v848_v11 = vmul.f32 %v1714_v5, %v2454_v1  ;;  %v849_v37 = vmul.f32 %v1715_v18, %v2454_v1  ;;  %v1567_v39 = vunpack.c.h.bf16 %v2360_v38  ;;  %v1723_v40 = vunpack.c.h.bf16 %v1721_v20 }
  0xdf   :  { %v2466_v41 = vrot.slane %v2412_v10, %v2198_v7  ;;  %v750_v43 = vadd.f32 %v746_v55, %v729_v16  ;;  %v829_v13 = vmul.f32 %v1710_v19, %v2440_v22  ;;  %v812_v0 = vadd.f32 %v808_v17, %v791_v54  ;;  %v1753_v17 = vld [vmem:[#allocation8 + $0x170] sm:$0xff]  }
  0xe0   :  { %v852_v52 = vadd.f32 %v848_v11, %v831_v44  ;;  %v853_v63 = vadd.f32 %v849_v37, %v832_v33  ;;  %v1718_v12 = vunpack.c.l.bf16 %v2458_v46  ;;  %v767_v38 = vmul.f32 %v1687_v58, %v2408_v34 }
  0xe1   :  { %v869_v27 = vmul.f32 %v1722_v35, %v2466_v41  ;;  %v870_v45 = vmul.f32 %v1723_v40, %v2466_v41  ;;  %v1695_v51 = vunpack.c.h.bf16 %v2416_v47  ;;  %v1730_v26 = vunpack.c.l.bf16 %v1729_v42 }
  0xe2   :  { %v1731_v32 = vunpack.c.h.bf16 %v1729_v42  ;;  %v428_v62 = vadd.f32 %v424_v29, %v407_v21  ;;  %v445_v9 = vmul.f32 %v1567_v39, %v2314_v48  ;;  %v2479_v59 = vrot.slane %v2412_v10, %v2200_v8 }
  0xe3   :  { %v873_v23 = vadd.f32 %v869_v27, %v852_v52  ;;  %v874_v31 = vadd.f32 %v870_v45, %v853_v63  ;;  %v1738_v60 = vunpack.c.l.bf16 %v1737_v57  ;;  %v1739_v6 = vunpack.c.h.bf16 %v1737_v57  ;;  %v1761_v27 = vld [vmem:[#allocation8 + $0x180] sm:$0xff]  }
  0xe4   :  { %v833_v5 = vadd.f32 %v829_v13, %v812_v0  ;;  %v850_v34 = vmul.f32 %v1718_v12, %v2454_v1  ;;  %v1726_v47 = vunpack.c.l.bf16 %v2474_v53  ;;  %v2485_v18 = vrot.slane %v2412_v10, %v2206_v14 }
  0xe5   :  { %v771_v20 = vadd.f32 %v767_v38, %v750_v43  ;;  %v788_v48 = vmul.f32 %v1695_v51, %v2420_v30  ;;  %v890_v50 = vmul.f32 %v1730_v26, %v2479_v59  ;;  %v891_v55 = vmul.f32 %v1731_v32, %v2479_v59  ;;  %v2501_v43 = vld [vmem:[#allocation8 + $0x158] sm:$0xff]  }
  0xe6   :  { %v911_v36 = vmul.f32 %v1738_v60, %v2485_v18  ;;  %v912_v16 = vmul.f32 %v1739_v6, %v2485_v18  ;;  %v1746_v54 = vunpack.c.l.bf16 %v1745_v25  ;;  %v1747_v19 = vunpack.c.h.bf16 %v1745_v25  ;;  %v2518_v60 = vld [vmem:[#allocation8 + $0x168] sm:$0xff]  }
  0xe7   :  { %v1703_v44 = vunpack.c.h.bf16 %v2430_v49  ;;  %v894_v33 = vadd.f32 %v890_v50, %v873_v23  ;;  %v895_v35 = vadd.f32 %v891_v55, %v874_v31  ;;  %v449_v21 = vadd.f32 %v445_v9, %v428_v62 }
  0xe8   :  { %v854_v58 = vadd.f32 %v850_v34, %v833_v5  ;;  %v871_v30 = vmul.f32 %v1726_v47, %v2466_v41  ;;  %v2498_v11 = vrot.slane %v2412_v10, %v2208_v15  ;;  %v1734_v37 = vunpack.c.l.bf16 %v2490_v28 }
  0xe9   :  { %v915_v29 = vadd.f32 %v911_v36, %v894_v33  ;;  %v916_v39 = vadd.f32 %v912_v16, %v895_v35  ;;  %v1754_v40 = vunpack.c.l.bf16 %v1753_v17  ;;  %v792_v42 = vadd.f32 %v788_v48, %v771_v20  ;;  %v1777_v20 = vld [vmem:[#allocation8 + $0x1a0] sm:$0xff]   ;;  %v1785_v35 = vld [vmem:[#allocation8 + $0x1b0] sm:$0xff]  }
  0xea   :  { %v932_v49 = vmul.f32 %v1746_v54, %v2498_v11  ;;  %v933_v13 = vmul.f32 %v1747_v19, %v2498_v11  ;;  %v809_v52 = vmul.f32 %v1703_v44, %v2434_v24  ;;  %v1711_v63 = vunpack.c.h.bf16 %v2445_v61  ;;  %v1769_v61 = vld [vmem:[#allocation8 + $0x190] sm:$0xff]   ;;  %v2533_v19 = vld [vmem:[#allocation8 + $0x178] sm:$0xff]  }
  0xeb   :  { %v1755_v0 = vunpack.c.h.bf16 %v1753_v17  ;;  %v2509_v12 = vrot.slane %v2412_v10, %v2212_v56  ;;  %v2511_v45 = vmax.f32 %v449_v21, 0.0  ;;  %v875_v57 = vadd.f32 %v871_v30, %v854_v58 }
  0xec   :  { %v936_v38 = vadd.f32 %v932_v49, %v915_v29  ;;  %v937_v51 = vadd.f32 %v933_v13, %v916_v39  ;;  %v892_v26 = vmul.f32 %v1734_v37, %v2479_v59  ;;  %v1742_v32 = vunpack.c.l.bf16 %v2501_v43 }
  0xed   :  { %v953_v62 = vmul.f32 %v1754_v40, %v2509_v12  ;;  %v954_v24 = vmul.f32 %v1755_v0, %v2509_v12  ;;  %v1762_v9 = vunpack.c.l.bf16 %v1761_v27  ;;  %v1763_v23 = vunpack.c.h.bf16 %v1761_v27 }
  0xee   :  { %v813_v31 = vadd.f32 %v809_v52, %v792_v42  ;;  %v830_v10 = vmul.f32 %v1711_v63, %v2440_v22  ;;  %v2522_v5 = vrot.slane %v2511_v45, %v2188_v2  ;;  %v1770_v34 = vunpack.c.l.bf16 %v1769_v61 }
  0xef   :  { %v957_v6 = vadd.f32 %v953_v62, %v936_v38  ;;  %v958_v25 = vadd.f32 %v954_v24, %v937_v51  ;;  %v1771_v47 = vunpack.c.h.bf16 %v1769_v61  ;;  %v1719_v48 = vunpack.c.h.bf16 %v2458_v46  ;;  %v1793_v38 = vld [vmem:[#allocation8 + $0x1c0] sm:$0xff]  }
  0xf0   :  { %v896_v50 = vadd.f32 %v892_v26, %v875_v57  ;;  %v913_v55 = vmul.f32 %v1742_v32, %v2485_v18  ;;  %v2528_v36 = vrot.slane %v2511_v45, %v2190_v3  ;;  %v1750_v22 = vunpack.c.l.bf16 %v2518_v60  ;;  %v2547_v57 = vld [vmem:[#allocation8 + $0x188] sm:$0xff]  }
  0xf1   :  { %v974_v16 = vmul.f32 %v1762_v9, %v2522_v5  ;;  %v975_v54 = vmul.f32 %v1763_v23, %v2522_v5  ;;  %v1778_v46 = vunpack.c.l.bf16 %v1777_v20  ;;  %v1779_v33 = vunpack.c.h.bf16 %v1777_v20  ;;  %v1801_v23 = vld [vmem:[#allocation8 + $0x1d0] sm:$0xff]  }
  0xf2   :  { %v995_v17 = vmul.f32 %v1770_v34, %v2528_v36  ;;  %v996_v44 = vmul.f32 %v1771_v47, %v2528_v36  ;;  %v834_v21 = vadd.f32 %v830_v10, %v813_v31  ;;  %v851_v37 = vmul.f32 %v1719_v48, %v2454_v1  ;;  %v2558_v10 = vld [vmem:[#allocation8 + $0x198] sm:$0xff]  }
  0xf3   :  { %v978_v58 = vadd.f32 %v974_v16, %v957_v6  ;;  %v979_v30 = vadd.f32 %v975_v54, %v958_v25  ;;  %v1727_v29 = vunpack.c.h.bf16 %v2474_v53  ;;  %v917_v39 = vadd.f32 %v913_v55, %v896_v50  ;;  %v1809_v50 = vld [vmem:[#allocation8 + $0x1e0] sm:$0xff]  }
  0xf4   :  { %v2541_v40 = vrot.slane %v2511_v45, %v2192_v4  ;;  %v934_v42 = vmul.f32 %v1750_v22, %v2498_v11  ;;  %v1758_v49 = vunpack.c.l.bf16 %v2533_v19  ;;  %v1786_v52 = vunpack.c.l.bf16 %v1785_v35 }
  0xf5   :  { %v999_v13 = vadd.f32 %v995_v17, %v978_v58  ;;  %v1000_v63 = vadd.f32 %v996_v44, %v979_v30  ;;  %v1787_v1 = vunpack.c.h.bf16 %v1785_v35  ;;  %v2551_v53 = vrot.slane %v2511_v45, %v2198_v7  ;;  %v1817_v30 = vld [vmem:[#allocation8 + $0x1f0] sm:$0xff]  }
  0xf6   :  { %v1016_v0 = vmul.f32 %v1778_v46, %v2541_v40  ;;  %v1017_v27 = vmul.f32 %v1779_v33, %v2541_v40  ;;  %v855_v51 = vadd.f32 %v851_v37, %v834_v21  ;;  %v872_v26 = vmul.f32 %v1727_v29, %v2466_v41  ;;  %v2574_v33 = vld [vmem:[#allocation8 + $0x1a8] sm:$0xff]  }
  0xf7   :  { %v1735_v62 = vunpack.c.h.bf16 %v2490_v28  ;;  %v938_v24 = vadd.f32 %v934_v42, %v917_v39  ;;  %v955_v61 = vmul.f32 %v1758_v49, %v2509_v12  ;;  %v1037_v9 = vmul.f32 %v1786_v52, %v2551_v53 }
  0xf8   :  { %v1020_v32 = vadd.f32 %v1016_v0, %v999_v13  ;;  %v1766_v31 = vunpack.c.l.bf16 %v2547_v57  ;;  %v1021_v6 = vadd.f32 %v1017_v27, %v1000_v63  ;;  %v1038_v25 = vmul.f32 %v1787_v1, %v2551_v53 }
  0xf9   :  { %v1794_v34 = vunpack.c.l.bf16 %v1793_v38  ;;  %v1795_v47 = vunpack.c.h.bf16 %v1793_v38  ;;  %v1743_v41 = vunpack.c.h.bf16 %v2501_v43  ;;  %v2564_v28 = vrot.slane %v2511_v45, %v2200_v8 }
  0xfa   :  { %v1041_v20 = vadd.f32 %v1037_v9, %v1020_v32  ;;  %v1802_v48 = vunpack.c.l.bf16 %v1801_v23  ;;  %v876_v55 = vadd.f32 %v872_v26, %v855_v51  ;;  %v893_v22 = vmul.f32 %v1735_v62, %v2479_v59  ;;  %v2588_v26 = vld [vmem:[#allocation8 + $0x1b8] sm:$0xff]  }
  0xfb   :  { %v1774_v16 = vunpack.c.l.bf16 %v2558_v10  ;;  %v2570_v54 = vrot.slane %v2511_v45, %v2206_v14  ;;  %v959_v17 = vadd.f32 %v955_v61, %v938_v24  ;;  %v976_v44 = vmul.f32 %v1766_v31, %v2522_v5 }
  0xfc   :  { %v1042_v43 = vadd.f32 %v1038_v25, %v1021_v6  ;;  %v1058_v46 = vmul.f32 %v1794_v34, %v2564_v28  ;;  %v1059_v35 = vmul.f32 %v1795_v47, %v2564_v28  ;;  %v1803_v21 = vunpack.c.h.bf16 %v1801_v23 }
  0xfd   :  { %v1079_v58 = vmul.f32 %v1802_v48, %v2570_v54  ;;  %v1810_v59 = vunpack.c.l.bf16 %v1809_v50  ;;  %v914_v37 = vmul.f32 %v1743_v41, %v2485_v18  ;;  %v897_v39 = vadd.f32 %v893_v22, %v876_v55  ;;  %v1134_v41 = vld [vmem:[#allocation11] sm:$0xff]  }
  0xfe   :  { %v1062_v29 = vadd.f32 %v1058_v46, %v1041_v20  ;;  %v1751_v42 = vunpack.c.h.bf16 %v2518_v60  ;;  %v997_v49 = vmul.f32 %v1774_v16, %v2528_v36  ;;  %v2583_v13 = vrot.slane %v2511_v45, %v2208_v15 }
  0xff   :  { %v980_v52 = vadd.f32 %v976_v44, %v959_v17  ;;  %v1782_v63 = vunpack.c.l.bf16 %v2574_v33  ;;  %v1818_v27 = vunpack.c.l.bf16 %v1817_v30  ;;  %v1063_v1 = vadd.f32 %v1059_v35, %v1042_v43 }
 0x100   :  { %v1083_v0 = vadd.f32 %v1079_v58, %v1062_v29  ;;  %v1080_v38 = vmul.f32 %v1803_v21, %v2570_v54  ;;  %v1811_v51 = vunpack.c.h.bf16 %v1809_v50  ;;  %v1100_v18 = vmul.f32 %v1810_v59, %v2583_v13  ;;  %v1152_v50 = vld [vmem:[#allocation11 + $0x8] sm:$0xff]   ;;  %v2609_v21 = vld [vmem:[#allocation8 + $0x1d8] sm:$0xff]  }
 0x101   :  { %v2592_v60 = vrot.slane %v2511_v45, %v2212_v56  ;;  %v918_v32 = vadd.f32 %v914_v37, %v897_v39  ;;  %v935_v62 = vmul.f32 %v1751_v42, %v2498_v11  ;;  %v1759_v24 = vunpack.c.h.bf16 %v2533_v19  ;;  %v2600_v45 = vld [vmem:[#allocation8 + $0x1c8] sm:$0xff]   ;;  %v1133_v39 = vld [vmem:[%s2708_s6] sm:$0xff]  ;;  %s2057_s6 = smov [#allocation13]  }
 0x102   :  { %v1104_v61 = vadd.f32 %v1100_v18, %v1083_v0  ;;  %v1001_v9 = vadd.f32 %v997_v49, %v980_v52  ;;  %v1018_v23 = vmul.f32 %v1782_v63, %v2541_v40  ;;  %v1790_v6 = vunpack.c.l.bf16 %v2588_v26  ;;  %v1170_v42 = vld [vmem:[#allocation11 + $0x10] sm:$0xff]   ;;  %s1428_s12 = sshll.u32 %s2057_s6, 4  ;;  %s1429_s12 = int_to_ptr.vmem [resolvable:$true] %s1428_s12 }
 0x103   :  { %v1121_v31 = vmul.f32 %v1818_v27, %v2592_v60  ;;  %v1084_v25 = vadd.f32 %v1080_v38, %v1063_v1  ;;  %v1101_v34 = vmul.f32 %v1811_v51, %v2583_v13  ;;  %v1819_v47 = vunpack.c.h.bf16 %v1817_v30  ;;  %s2015_s15 = scalar_lea.vmem %s1429_s12, 128  ;;  %p2020_p7 = scmp.lt.s32.totalorder %s1429_s12, %s1429_s12 }
 0x104   :  { %v939_v48 = vadd.f32 %v935_v62, %v918_v32  ;;  %v956_v11 = vmul.f32 %v1759_v24, %v2509_v12  ;;  %v1767_v19 = vunpack.c.h.bf16 %v2547_v57  ;;  %v1022_v55 = vadd.f32 %v1018_v23, %v1001_v9  ;;  %v1188_v24 = vld [vmem:[#allocation11 + $0x18] sm:$0xff]   ;;  %p2016_p6 = scmp.ne.s32.totalorder %s1429_s12, %s2015_s15  ;;  %p2021_p8 = scmp.lt.s32.totalorder %s2015_s15, %s2015_s15 }
 0x105   :  { %v1125_v20 = vadd.f32 %v1121_v31, %v1104_v61  ;;  %v1135_v16 = vunpack.c.l.bf16 %v1134_v41  ;;  %v1144_v17 = vunpack.c.h.bf16 %v1134_v41  ;;  %v1039_v44 = vmul.f32 %v1790_v6, %v2551_v53 }
 0x106   :  { %v1798_v43 = vunpack.c.l.bf16 %v2600_v45  ;;  %v1105_v46 = vadd.f32 %v1101_v34, %v1084_v25  ;;  %v1122_v35 = vmul.f32 %v1819_v47, %v2592_v60  ;;  %v1153_v58 = vunpack.c.l.bf16 %v1152_v50  ;;  %p2022_p9 = por %p2021_p8, %p2020_p7 }
 0x107   :  { %v2604_v22 = vmax.f32 %v1125_v20, 0.0  ;;  %v960_v30 = vadd.f32 %v956_v11, %v939_v48  ;;  %v977_v37 = vmul.f32 %v1767_v19, %v2522_v5  ;;  %v1775_v29 = vunpack.c.h.bf16 %v2558_v10  ;;  %v2626_v5 = vld [vmem:[#allocation8 + $0x1e8] sm:$0xff]   ;;  %v2636_v11 = vld [vmem:[#allocation8 + $0x1f8] sm:$0xff]  }
 0x108   :  { %v1162_v63 = vunpack.c.h.bf16 %v1152_v50  ;;  %v1043_v27 = vadd.f32 %v1039_v44, %v1022_v55  ;;  %v1060_v1 = vmul.f32 %v1798_v43, %v2564_v28  ;;  %v1806_v38 = vunpack.c.l.bf16 %v2609_v21  ;;  %p2023_p10 = pnand %p2022_p9, %p2016_p6 }
 0x109   :  { %v1139_v12 = vrot.slane %v2604_v22, %v2188_v2  ;;  %v1148_v57 = vrot.slane %v2604_v22, %v2190_v3  ;;  %v1157_v59 = vrot.slane %v2604_v22, %v2192_v4  ;;  %v1166_v0 = vrot.slane %v2604_v22, %v2198_v7 }
 0x10a   :  { %v1126_v51 = vadd.f32 %v1122_v35, %v1105_v46  ;;  %v1171_v32 = vunpack.c.l.bf16 %v1170_v42  ;;  %v1175_v62 = vrot.slane %v2604_v22, %v2200_v8  ;;  %v981_v61 = vadd.f32 %v977_v37, %v960_v30 }
 0x10b   :  { %v1140_v49 = vmul.f32 %v1139_v12, %v1135_v16  ;;  %v1149_v52 = vmul.f32 %v1148_v57, %v1144_v17  ;;  %v1158_v18 = vmul.f32 %v1157_v59, %v1153_v58  ;;  %v998_v9 = vmul.f32 %v1775_v29, %v2528_v36  ;;  %v1206_v17 = vld [vmem:[#allocation11 + $0x20] sm:$0xff]  }
 0x10c   :  { %v1783_v23 = vunpack.c.h.bf16 %v2574_v33  ;;  %v1167_v6 = vmul.f32 %v1166_v0, %v1162_v63  ;;  %v1180_v25 = vunpack.c.h.bf16 %v1170_v42  ;;  %v1184_v34 = vrot.slane %v2604_v22, %v2206_v14  ;;  %v1224_v42 = vld [vmem:[#allocation11 + $0x28] sm:$0xff]  }
 0x10d   :  { %v1141_v10 = vadd.f32 %v1140_v49, %v1133_v39  ;;  %v1064_v47 = vadd.f32 %v1060_v1, %v1043_v27  ;;  %v1081_v41 = vmul.f32 %v1806_v38, %v2570_v54  ;;  %v1814_v20 = vunpack.c.l.bf16 %v2626_v5 }
 0x10e   :  { %v1189_v48 = vunpack.c.l.bf16 %v1188_v24  ;;  %v2638_v19 = vmax.f32 %v1126_v51, 0.0  ;;  %v1176_v36 = vmul.f32 %v1175_v62, %v1171_v32  ;;  %v1193_v33 = vrot.slane %v2604_v22, %v2208_v15  ;;  %v1242_v32 = vld [vmem:[#allocation11 + $0x30] sm:$0xff]  }
 0x10f   :  { %v1150_v31 = vadd.f32 %v1149_v52, %v1141_v10  ;;  %v1002_v55 = vadd.f32 %v998_v9, %v981_v61  ;;  %v1019_v16 = vmul.f32 %v1783_v23, %v2541_v40  ;;  %v1185_v43 = vmul.f32 %v1184_v34, %v1180_v25 }
 0x110   :  { %v1198_v46 = vunpack.c.h.bf16 %v1188_v24  ;;  %v1202_v35 = vrot.slane %v2604_v22, %v2212_v56  ;;  %v1791_v12 = vunpack.c.h.bf16 %v2588_v26  ;;  %v1085_v57 = vadd.f32 %v1081_v41, %v1064_v47  ;;  %v1260_v41 = vld [vmem:[#allocation11 + $0x38] sm:$0xff]  }
 0x111   :  { %v1159_v50 = vadd.f32 %v1158_v18, %v1150_v31  ;;  %v1102_v58 = vmul.f32 %v1814_v20, %v2583_v13  ;;  %v1822_v59 = vunpack.c.l.bf16 %v2636_v11  ;;  %v1194_v37 = vmul.f32 %v1193_v33, %v1189_v48 }
 0x112   :  { %v1207_v29 = vunpack.c.l.bf16 %v1206_v17  ;;  %v1211_v40 = vrot.slane %v2638_v19, %v2188_v2  ;;  %v1023_v39 = vadd.f32 %v1019_v16, %v1002_v55  ;;  %v1203_v52 = vmul.f32 %v1202_v35, %v1198_v46  ;;  %v1278_v46 = vld [vmem:[#allocation11 + $0x40] sm:$0xff]  }
 0x113   :  { %v1168_v44 = vadd.f32 %v1167_v6, %v1159_v50  ;;  %v1216_v63 = vunpack.c.h.bf16 %v1206_v17  ;;  %v1220_v22 = vrot.slane %v2638_v19, %v2190_v3  ;;  %v1040_v26 = vmul.f32 %v1791_v12, %v2551_v53 }
 0x114   :  { %v1799_v0 = vunpack.c.h.bf16 %v2600_v45  ;;  %v1106_v27 = vadd.f32 %v1102_v58, %v1085_v57  ;;  %v1123_v1 = vmul.f32 %v1822_v59, %v2592_v60  ;;  %v1212_v51 = vmul.f32 %v1211_v40, %v1207_v29 }
 0x115   :  { %v1177_v30 = vadd.f32 %v1176_v36, %v1168_v44  ;;  %v1225_v10 = vunpack.c.l.bf16 %v1224_v42  ;;  %v1229_v18 = vrot.slane %v2638_v19, %v2192_v4  ;;  %v1221_v24 = vmul.f32 %v1220_v22, %v1216_v63 }
 0x116   :  { %v1234_v61 = vunpack.c.h.bf16 %v1224_v42  ;;  %v1238_v9 = vrot.slane %v2638_v19, %v2198_v7  ;;  %v1044_v23 = vadd.f32 %v1040_v26, %v1023_v39  ;;  %v1061_v53 = vmul.f32 %v1799_v0, %v2564_v28  ;;  %v1296_v39 = vld [vmem:[#allocation11 + $0x48] sm:$0xff]  }
 0x117   :  { %v1186_v49 = vadd.f32 %v1185_v43, %v1177_v30  ;;  %v1807_v45 = vunpack.c.h.bf16 %v2609_v21  ;;  %v1127_v31 = vadd.f32 %v1123_v1, %v1106_v27  ;;  %v1230_v25 = vmul.f32 %v1229_v18, %v1225_v10 }
 0x118   :  { %v1243_v34 = vunpack.c.l.bf16 %v1242_v32  ;;  %v1247_v47 = vrot.slane %v2638_v19, %v2200_v8  ;;  %v1239_v48 = vmul.f32 %v1238_v9, %v1234_v61  ;;  %v1252_v50 = vunpack.c.h.bf16 %v1242_v32  ;;  %v1332_v9 = vld [vmem:[#allocation11 + $0x58] sm:$0xff]  }
 0x119   :  { %v1195_v38 = vadd.f32 %v1194_v37, %v1186_v49  ;;  %v1256_v36 = vrot.slane %v2638_v19, %v2206_v14  ;;  %v1065_v33 = vadd.f32 %v1061_v53, %v1044_v23  ;;  %v1082_v55 = vmul.f32 %v1807_v45, %v2570_v54 }
 0x11a   :  { %v1815_v28 = vunpack.c.h.bf16 %v2626_v5  ;;  %v1131_v21 = vmax.f32 %v1127_v31, 0.0  ;;  %v1248_v17 = vmul.f32 %v1247_v47, %v1243_v34  ;;  %v1261_v44 = vunpack.c.l.bf16 %v1260_v41 }
 0x11b   :  { %v1204_v62 = vadd.f32 %v1203_v52, %v1195_v38  ;;  %v1265_v43 = vrot.slane %v2638_v19, %v2208_v15  ;;  %v1257_v12 = vmul.f32 %v1256_v36, %v1252_v50  ;;  %v1270_v57 = vunpack.c.h.bf16 %v1260_v41  ;;  %v1350_v41 = vld [vmem:[#allocation11 + $0x60] sm:$0xff]  }
 0x11c   :  { %v1274_v58 = vrot.slane %v2638_v19, %v2212_v56  ;;  %v1086_v59 = vadd.f32 %v1082_v55, %v1065_v33  ;;  %v1103_v30 = vmul.f32 %v1815_v28, %v2583_v13  ;;  %v1823_v54 = vunpack.c.h.bf16 %v2636_v11  ;;  %v1314_v11 = vld [vmem:[#allocation11 + $0x50] sm:$0xff]  }
 0x11d   :  { %v1213_v6 = vadd.f32 %v1212_v51, %v1204_v62  ;;  %v1266_v37 = vmul.f32 %v1265_v43, %v1261_v44  ;;  %v1279_v29 = vunpack.c.l.bf16 %v1278_v46  ;;  %v1283_v40 = vrot.slane %v1131_v21, %v2188_v2 }
 0x11e   :  { %v1275_v49 = vmul.f32 %v1274_v58, %v1270_v57  ;;  %v1288_v52 = vunpack.c.h.bf16 %v1278_v46  ;;  %v1292_v63 = vrot.slane %v1131_v21, %v2190_v3  ;;  %v1107_v22 = vadd.f32 %v1103_v30, %v1086_v59  ;;  %v1386_v30 = vld [vmem:[#allocation11 + $0x70] sm:$0xff]  }
 0x11f   :  { %v1222_v20 = vadd.f32 %v1221_v24, %v1213_v6  ;;  %v1124_v26 = vmul.f32 %v1823_v54, %v2592_v60  ;;  %v1284_v0 = vmul.f32 %v1283_v40, %v1279_v29  ;;  %v1297_v27 = vunpack.c.l.bf16 %v1296_v39 }
 0x120   :  { %v1301_v13 = vrot.slane %v1131_v21, %v2192_v4  ;;  %v1293_v38 = vmul.f32 %v1292_v63, %v1288_v52  ;;  %v1306_v51 = vunpack.c.h.bf16 %v1296_v39  ;;  %v1310_v10 = vrot.slane %v1131_v21, %v2198_v7 }
 0x121   :  { %v1231_v16 = vadd.f32 %v1230_v25, %v1222_v20  ;;  %v1128_v18 = vadd.f32 %v1124_v26, %v1107_v22  ;;  %v1315_v24 = vunpack.c.l.bf16 %v1314_v11  ;;  %v1319_v61 = vrot.slane %v1131_v21, %v2200_v8 }
 0x122   :  { %v1302_v62 = vmul.f32 %v1301_v13, %v1297_v27  ;;  %v1311_v60 = vmul.f32 %v1310_v10, %v1306_v51  ;;  %v1324_v53 = vunpack.c.h.bf16 %v1314_v11  ;;  %v1328_v45 = vrot.slane %v1131_v21, %v2206_v14 }
 0x123   :  { %v1240_v35 = vadd.f32 %v1239_v48, %v1231_v16  ;;  %v1132_v31 = vmax.f32 %v1128_v18, 0.0  ;;  %v1320_v25 = vmul.f32 %v1319_v61, %v1315_v24  ;;  %v1333_v34 = vunpack.c.l.bf16 %v1332_v9 }
 0x124   :  { %v1337_v47 = vrot.slane %v1131_v21, %v2208_v15  ;;  %v1329_v48 = vmul.f32 %v1328_v45, %v1324_v53  ;;  %v1342_v50 = vunpack.c.h.bf16 %v1332_v9  ;;  %v1346_v36 = vrot.slane %v1131_v21, %v2212_v56 }
 0x125   :  { %v1249_v5 = vadd.f32 %v1248_v17, %v1240_v35  ;;  %v1351_v28 = vunpack.c.l.bf16 %v1350_v41  ;;  %v1355_v16 = vrot.slane %v1132_v31, %v2188_v2  ;;  %v1368_v17 = vld [vmem:[#allocation11 + $0x68] sm:$0xff]   ;;  %v1360_v46 = vunpack.c.h.bf16 %v1350_v41 }
 0x126   :  { %v1338_v55 = vmul.f32 %v1337_v47, %v1333_v34  ;;  %v1347_v43 = vmul.f32 %v1346_v36, %v1342_v50  ;;  %v1364_v35 = vrot.slane %v1132_v31, %v2190_v3  ;;  %v1369_v58 = vunpack.c.l.bf16 %v1368_v17 }
 0x127   :  { %v1258_v42 = vadd.f32 %v1257_v12, %v1249_v5  ;;  %v1356_v57 = vmul.f32 %v1355_v16, %v1351_v28  ;;  %v1373_v59 = vrot.slane %v1132_v31, %v2192_v4  ;;  %v1378_v21 = vunpack.c.h.bf16 %v1368_v17 }
 0x128   :  { %v1365_v5 = vmul.f32 %v1364_v35, %v1360_v46  ;;  %v1387_v2 = vunpack.c.l.bf16 %v1386_v30  ;;  %v1391_v39 = vrot.slane %v1132_v31, %v2200_v8  ;;  %v1396_v3 = vunpack.c.h.bf16 %v1386_v30 }
 0x129   :  { %v1267_v19 = vadd.f32 %v1266_v37, %v1258_v42  ;;  %v1382_v37 = vrot.slane %v1132_v31, %v2198_v7  ;;  %v1374_v40 = vmul.f32 %v1373_v59, %v1369_v58  ;;  %v1404_v42 = vld [vmem:[#allocation11 + $0x78] sm:$0xff]   ;;  %v1400_v63 = vrot.slane %v1132_v31, %v2206_v14 }
 0x12a   :  { %v1392_v26 = vmul.f32 %v1391_v39, %v1387_v2  ;;  %v1405_v4 = vunpack.c.l.bf16 %v1404_v42  ;;  %v1414_v13 = vunpack.c.h.bf16 %v1404_v42  ;;  %v1418_v7 = vrot.slane %v1132_v31, %v2212_v56 }
 0x12b   :  { %v1276_v1 = vadd.f32 %v1275_v49, %v1267_v19  ;;  %v1383_v52 = vmul.f32 %v1382_v37, %v1378_v21  ;;  %v1409_v19 = vrot.slane %v1132_v31, %v2208_v15  ;;  %v1401_v27 = vmul.f32 %v1400_v63, %v1396_v3 }
 0x12c   :  { %v1419_v8 = vmul.f32 %v1418_v7, %v1414_v13 }
 0x12d   :  { %v1285_v32 = vadd.f32 %v1284_v0, %v1276_v1  ;;  %v1410_v1 = vmul.f32 %v1409_v19, %v1405_v4 }
 0x12f   :  { %v1294_v23 = vadd.f32 %v1293_v38, %v1285_v32 }
 0x131   :  { %v1303_v6 = vadd.f32 %v1302_v62, %v1294_v23 }
 0x133   :  { %v1312_v20 = vadd.f32 %v1311_v60, %v1303_v6 }
 0x135   :  { %v1321_v33 = vadd.f32 %v1320_v25, %v1312_v20 }
 0x137   :  { %v1330_v44 = vadd.f32 %v1329_v48, %v1321_v33 }
 0x139   :  { %v1339_v12 = vadd.f32 %v1338_v55, %v1330_v44 }
 0x13b   :  { %v1348_v54 = vadd.f32 %v1347_v43, %v1339_v12 }
 0x13d   :  { %v1357_v29 = vadd.f32 %v1356_v57, %v1348_v54 }
 0x13f   :  { %v1366_v49 = vadd.f32 %v1365_v5, %v1357_v29 }
 0x141   :  { %v1375_v22 = vadd.f32 %v1374_v40, %v1366_v49 }
 0x143   :  { %v1384_v0 = vadd.f32 %v1383_v52, %v1375_v22 }
 0x145   :  { %v1393_v11 = vadd.f32 %v1392_v26, %v1384_v0 }
 0x147   :  { %v1402_v38 = vadd.f32 %v1401_v27, %v1393_v11 }
 0x149   :  { %v1411_v51 = vadd.f32 %v1410_v1, %v1402_v38 }
 0x14b   :  { %v1420_v10 = vadd.f32 %v1419_v8, %v1411_v51 }
 0x14d   :  { %1421 = vst [vmem:[#allocation13] sm:$0xff] %v1420_v10 }
 0x14e   :  { %2026 = shalt.err (!%p2023_p10)
}
 0x14f   :  { %s2027_s29 = scalar_lea.hbm %s2709_s7, 128 }
 0x150   :  { %p2028_p11 = scmp.ne.s32.totalorder %s2709_s7, %s2027_s29  ;;  %p2031_p12 = scmp.lt.u32.totalorder %s2027_s29, %s2709_s7 }
 0x152   :  { %p2033_p13 = pnand %p2031_p12, %p2028_p11 }
 0x154   :  { %2036 = shalt.err (!%p2033_p13)
}
 0x155   :  { %1431 = dma.vmem_to_hbm [thread:$0]  %s1429_s12, 128, %s2709_s7, [#allocation4]  }
 0x156   :  { %2045 = dma.done.wait [#allocation4], 128  }
 0x157   :  { %2046 = vsyncadd [#allocation4], 4294967168 }
 0x158   :  { %1435 = vsyncpa [#allocation3], 1 }
 0x159   :  { %1436 = vsyncpa [#allocation6], 1 }
 0x15a   :  { %1437 = vsyncpa [#allocation9], 1 }
 0x15b   :  { %1438 = vsyncpa [#allocation12], 1 }
 0x15c   :  { %1439 = vsyncpa [#allocation4], 1 }

</bundles_post_ra>
